<compile_context>
chip_gen: v7x
topology: tpu7x:2x2x1
jax: 0.10.0
libtpu: 0.0.40
codegen_flags: <defaults>
</compile_context>

<pallas_src>
import jax
import jax.numpy as jnp
from jax.experimental import pallas as pl
from jax.experimental.pallas import tpu as pltpu

NUM_CLASSES = 5
NUM_CLASSES_PAD = 128      # lane-dense output slab


def _round_up(n, m):
    return ((n + m - 1) // m) * m


# -----------------------------------------------------------------------------
# Pallas kernel: fused classification head (3 matmuls + ReLU + log-softmax)
#   x_ref  : [TILE_B, 768]  bf16
#   w*_ref : bf16 weights ([768,512], [512,256], [256,128(padded)])
#   b*_ref : f32 biases ([1,512], [1,256], [1,128] with padded lanes = -1e30)
#   o_ref  : [TILE_B, 128]  f32 (padded lanes hold large-negative log-probs)
# -----------------------------------------------------------------------------
def bert_head_kernel(x_ref, w1_ref, b1_ref, w2_ref, b2_ref, w3_ref, b3_ref, o_ref):
    x = x_ref[...]                                                   # bf16 [TB, 768]

    h1 = jnp.dot(x, w1_ref[...], preferred_element_type=jnp.float32) + b1_ref[...]
    h1 = jnp.maximum(h1, 0.0)                                        # ReLU in f32
    # dropout(p=0.1): identity in eval mode

    h2 = jnp.dot(h1.astype(jnp.bfloat16), w2_ref[...],
                 preferred_element_type=jnp.float32) + b2_ref[...]
    h2 = jnp.maximum(h2, 0.0)                                        # ReLU in f32
    # dropout(p=0.1): identity in eval mode

    logits = jnp.dot(h2.astype(jnp.bfloat16), w3_ref[...],
                     preferred_element_type=jnp.float32) + b3_ref[...]  # [TB, 128]
    # padded lanes carry a -1e30 bias -> they never win the max and exp() to 0.

    # LogSoftmax over classes (f32)
    m = jnp.max(logits, axis=-1, keepdims=True)
    z = logits - m
    lse = jnp.log(jnp.sum(jnp.exp(z), axis=-1, keepdims=True))
    o_ref[...] = (z - lse).astype(o_ref.dtype)


def bert_head_pallas(cls_hs, w1, b1, w2, b2, w3, b3, *, tile_b=128):
    """cls_hs [B,768] f32; weights [in,out] f32; biases [1,out] f32 -> [B,5] log-probs f32."""
    B = cls_hs.shape[0]
    tile_b = min(tile_b, _round_up(B, 8))          # small-batch friendly, (8,128)-aligned
    Bp = _round_up(B, tile_b)

    # --- operand prep: bf16 weights/activations, f32 biases, lane-dense padded fc3 ---
    x = cls_hs.astype(jnp.bfloat16)
    if Bp != B:
        x = jnp.pad(x, ((0, Bp - B), (0, 0)))

    w1b = w1.astype(jnp.bfloat16)
    w2b = w2.astype(jnp.bfloat16)
    w3b = jnp.pad(w3, ((0, 0), (0, NUM_CLASSES_PAD - NUM_CLASSES))).astype(jnp.bfloat16)

    b1f = b1.astype(jnp.float32)
    b2f = b2.astype(jnp.float32)
    b3f = jnp.pad(b3.astype(jnp.float32),
                  ((0, 0), (0, NUM_CLASSES_PAD - NUM_CLASSES)),
                  constant_values=-1e30)           # padded logits -> effectively -inf

    grid = (Bp // tile_b,)

    in_specs = [
        pl.BlockSpec((tile_b, 768), lambda i: (i, 0)),       # x: tiled over batch
        pl.BlockSpec((768, 512), lambda i: (0, 0)),          # weights/biases: VMEM-resident
        pl.BlockSpec((1, 512), lambda i: (0, 0)),
        pl.BlockSpec((512, 256), lambda i: (0, 0)),
        pl.BlockSpec((1, 256), lambda i: (0, 0)),
        pl.BlockSpec((256, NUM_CLASSES_PAD), lambda i: (0, 0)),
        pl.BlockSpec((1, NUM_CLASSES_PAD), lambda i: (0, 0)),
    ]
    out_spec = pl.BlockSpec((tile_b, NUM_CLASSES_PAD), lambda i: (i, 0))

    out_padded = pl.pallas_call(
        bert_head_kernel,
        out_shape=jax.ShapeDtypeStruct((Bp, NUM_CLASSES_PAD), jnp.float32),
        grid=grid,
        in_specs=in_specs,
        out_specs=out_spec,
        compiler_params=pltpu.CompilerParams(
            dimension_semantics=("parallel",),     # batch tiles independent (2 TCs on v7x)
            vmem_limit_bytes=32 * 1024 * 1024,
        ),
    )(x, w1b, b1f, w2b, b2f, w3b, b3f)

    return out_padded[:B, :NUM_CLASSES]


# -----------------------------------------------------------------------------
# Synthetic deterministic mini-BERT backbone (plain JAX glue): (sent_id, mask) -> cls_hs [B,768]
# -----------------------------------------------------------------------------
HIDDEN = 768
N_HEADS = 12
HEAD_DIM = HIDDEN // N_HEADS
FFN = 1024          # small synthetic intermediate size (real BERT uses 3072)
VOCAB = 100
LN_EPS = 1e-12


def _layer_norm(x, g, b):
    mu = jnp.mean(x, axis=-1, keepdims=True)
    var = jnp.mean((x - mu) ** 2, axis=-1, keepdims=True)
    return (x - mu) * jax.lax.rsqrt(var + LN_EPS) * g + b


def init_backbone_params(key):
    ks = jax.random.split(key, 12)
    s = 0.02
    return {
        "tok_emb": jax.random.normal(ks[0], (VOCAB, HIDDEN), jnp.float32) * s,
        "pos_emb": jax.random.normal(ks[1], (512, HIDDEN), jnp.float32) * s,
        "ln0_g": jnp.ones((HIDDEN,), jnp.float32),
        "ln0_b": jnp.zeros((HIDDEN,), jnp.float32),
        "wq": jax.random.normal(ks[2], (HIDDEN, HIDDEN), jnp.float32) * s,
        "bq": jnp.zeros((HIDDEN,), jnp.float32),
        "wk": jax.random.normal(ks[3], (HIDDEN, HIDDEN), jnp.float32) * s,
        "bk": jnp.zeros((HIDDEN,), jnp.float32),
        "wv": jax.random.normal(ks[4], (HIDDEN, HIDDEN), jnp.float32) * s,
        "bv": jnp.zeros((HIDDEN,), jnp.float32),
        "wo": jax.random.normal(ks[5], (HIDDEN, HIDDEN), jnp.float32) * s,
        "bo": jnp.zeros((HIDDEN,), jnp.float32),
        "ln1_g": jnp.ones((HIDDEN,), jnp.float32),
        "ln1_b": jnp.zeros((HIDDEN,), jnp.float32),
        "wi": jax.random.normal(ks[6], (HIDDEN, FFN), jnp.float32) * s,
        "bi": jnp.zeros((FFN,), jnp.float32),
        "wp": jax.random.normal(ks[7], (FFN, HIDDEN), jnp.float32) * s,
        "bp": jnp.zeros((HIDDEN,), jnp.float32),
        "ln2_g": jnp.ones((HIDDEN,), jnp.float32),
        "ln2_b": jnp.zeros((HIDDEN,), jnp.float32),
    }


def mini_bert_backbone(sent_id, mask, p):
    B, S = sent_id.shape
    tok = p["tok_emb"][sent_id]                      # [B, S, H]
    pos = p["pos_emb"][:S][None, :, :]               # [1, S, H]
    h = _layer_norm(tok + pos, p["ln0_g"], p["ln0_b"])

    def heads(x):
        return x.reshape(B, S, N_HEADS, HEAD_DIM).transpose(0, 2, 1, 3)

    q = heads(h @ p["wq"] + p["bq"])
    k = heads(h @ p["wk"] + p["bk"])
    v = heads(h @ p["wv"] + p["bv"])
    scores = jnp.einsum("bhqd,bhkd->bhqk", q, k) / jnp.sqrt(float(HEAD_DIM))
    add_mask = (1.0 - mask.astype(jnp.float32))[:, None, None, :] * -1e9
    attn = jax.nn.softmax(scores + add_mask, axis=-1)
    ctx = jnp.einsum("bhqk,bhkd->bhqd", attn, v).transpose(0, 2, 1, 3).reshape(B, S, HIDDEN)
    h = _layer_norm(h + (ctx @ p["wo"] + p["bo"]), p["ln1_g"], p["ln1_b"])

    ff = jax.nn.gelu(h @ p["wi"] + p["bi"]) @ p["wp"] + p["bp"]
    h = _layer_norm(h + ff, p["ln2_g"], p["ln2_b"])

    return h[:, 0]                                   # CLS hidden state [B, 768]


# -----------------------------------------------------------------------------
# Head parameter init (mirrors nn.Linear(768,512), (512,256), (256,5))
# -----------------------------------------------------------------------------
def init_head_params(key):
    def linear(k, fan_in, fan_out):
        k1, k2 = jax.random.split(k)
        bound = 1.0 / jnp.sqrt(fan_in)
        w = jax.random.uniform(k1, (fan_in, fan_out), jnp.float32, -bound, bound)
        b = jax.random.uniform(k2, (1, fan_out), jnp.float32, -bound, bound)
        return w, b

    k1, k2, k3 = jax.random.split(key, 3)
    w1, b1 = linear(k1, 768, 512)
    w2, b2 = linear(k2, 512, 256)
    w3, b3 = linear(k3, 256, NUM_CLASSES)
    return w1, b1, w2, b2, w3, b3


def head_reference(cls_hs, w1, b1, w2, b2, w3, b3):
    """f32 reference (the Pallas kernel uses bf16 weights/activations, f32 accumulate)."""
    h = jnp.maximum(cls_hs @ w1 + b1, 0.0)
    h = jnp.maximum(h @ w2 + b2, 0.0)
    logits = h @ w3 + b3
    return jax.nn.log_softmax(logits, axis=1)


if __name__ == "__main__":
    key = jax.random.PRNGKey(0)
    k_bb, k_head, k_ids, k_mask = jax.random.split(key, 4)

    B, S = 8, 8
    sent_id = jax.random.randint(k_ids, (B, S), 0, VOCAB, dtype=jnp.int32)
    mask = jnp.ones((B, S), dtype=jnp.int32).at[:, -2:].set(0)   # pad last 2 tokens

    bb_params = init_backbone_params(k_bb)
    w1, b1, w2, b2, w3, b3 = init_head_params(k_head)

    # backbone (plain JAX glue) -> fused Pallas head kernel
    cls_hs = mini_bert_backbone(sent_id, mask, bb_params)        # [B, 768]
    out = bert_head_pallas(cls_hs, w1, b1, w2, b2, w3, b3)       # [B, 5] log-probs
    out = jax.block_until_ready(out)

    ref = head_reference(cls_hs, w1, b1, w2, b2, w3, b3)
    assert out.shape == (B, NUM_CLASSES)
    # bf16 weights/activations with f32 accumulation -> looser tolerance vs f32 reference
    assert jnp.allclose(out, ref, atol=5e-2), "Pallas head mismatch vs JAX reference"
    # log-softmax sanity: probabilities sum to 1
    assert jnp.allclose(jnp.sum(jnp.exp(out), axis=1), 1.0, atol=1e-3)

    print("KERNEL_OK")
</pallas_src>

<mosaic_0001>
module attributes {stable_mosaic.version = 11 : i64} {
  func.func @bert_head_kernel(%arg0: i32, %arg1: memref<8x768xbf16, #tpu.memory_space<vmem>>, %arg2: memref<768x512xbf16, #tpu.memory_space<vmem>>, %arg3: memref<1x512xf32, #tpu.memory_space<vmem>>, %arg4: memref<512x256xbf16, #tpu.memory_space<vmem>>, %arg5: memref<1x256xf32, #tpu.memory_space<vmem>>, %arg6: memref<256x128xbf16, #tpu.memory_space<vmem>>, %arg7: memref<1x128xf32, #tpu.memory_space<vmem>>, %arg8: memref<8x128xf32, #tpu.memory_space<vmem>>) attributes {dimension_semantics = [#tpu.dimension_semantics<parallel>], iteration_bounds = array<i64: 1>, scalar_prefetch = 0 : i64, scratch_operands = 0 : i64, tpu.core_type = #tpu.core_type<tc>, window_params = [{transform_indices = @transform_0, window_bounds = array<i64: 8, 768>}, {pipeline_mode = #tpu.pipeline_mode<synchronous>, transform_indices = @transform_1, window_bounds = array<i64: 768, 512>}, {pipeline_mode = #tpu.pipeline_mode<synchronous>, transform_indices = @transform_2, window_bounds = array<i64: 1, 512>}, {pipeline_mode = #tpu.pipeline_mode<synchronous>, transform_indices = @transform_3, window_bounds = array<i64: 512, 256>}, {pipeline_mode = #tpu.pipeline_mode<synchronous>, transform_indices = @transform_4, window_bounds = array<i64: 1, 256>}, {pipeline_mode = #tpu.pipeline_mode<synchronous>, transform_indices = @transform_5, window_bounds = array<i64: 256, 128>}, {pipeline_mode = #tpu.pipeline_mode<synchronous>, transform_indices = @transform_6, window_bounds = array<i64: 1, 128>}, {transform_indices = @transform_7, window_bounds = array<i64: 8, 128>}]} {
    %c0 = arith.constant 0 : index
    %c0_0 = arith.constant 0 : index
    %0 = vector.load %arg1[%c0, %c0_0] : memref<8x768xbf16, #tpu.memory_space<vmem>>, vector<8x768xbf16>
    %c0_1 = arith.constant 0 : index
    %c0_2 = arith.constant 0 : index
    %1 = vector.load %arg2[%c0_1, %c0_2] : memref<768x512xbf16, #tpu.memory_space<vmem>>, vector<768x512xbf16>
    %cst = arith.constant dense<0.000000e+00> : vector<8x512xf32>
    %2 = tpu.matmul %0, %1, %cst {dimension_numbers = #tpu.dot_dimension_numbers<[1], [0], [0], [1], [0, 0, 1, 1], [], []>} : vector<8x768xbf16>, vector<768x512xbf16>, vector<8x512xf32> -> vector<8x512xf32>
    %c0_3 = arith.constant 0 : index
    %c0_4 = arith.constant 0 : index
    %3 = vector.load %arg3[%c0_3, %c0_4] : memref<1x512xf32, #tpu.memory_space<vmem>>, vector<1x512xf32>
    %4 = vector.broadcast %3 : vector<1x512xf32> to vector<8x512xf32>
    %5 = arith.addf %2, %4 : vector<8x512xf32>
    %cst_5 = arith.constant 0.000000e+00 : f32
    %6 = vector.broadcast %cst_5 : f32 to vector<8x512xf32>
    %7 = arith.maximumf %5, %6 : vector<8x512xf32>
    %8 = arith.truncf %7 : vector<8x512xf32> to vector<8x512xbf16>
    %c0_6 = arith.constant 0 : index
    %c0_7 = arith.constant 0 : index
    %9 = vector.load %arg4[%c0_6, %c0_7] : memref<512x256xbf16, #tpu.memory_space<vmem>>, vector<512x256xbf16>
    %cst_8 = arith.constant dense<0.000000e+00> : vector<8x256xf32>
    %10 = tpu.matmul %8, %9, %cst_8 {dimension_numbers = #tpu.dot_dimension_numbers<[1], [0], [0], [1], [0, 0, 1, 1], [], []>} : vector<8x512xbf16>, vector<512x256xbf16>, vector<8x256xf32> -> vector<8x256xf32>
    %c0_9 = arith.constant 0 : index
    %c0_10 = arith.constant 0 : index
    %11 = vector.load %arg5[%c0_9, %c0_10] : memref<1x256xf32, #tpu.memory_space<vmem>>, vector<1x256xf32>
    %12 = vector.broadcast %11 : vector<1x256xf32> to vector<8x256xf32>
    %13 = arith.addf %10, %12 : vector<8x256xf32>
    %cst_11 = arith.constant 0.000000e+00 : f32
    %14 = vector.broadcast %cst_11 : f32 to vector<8x256xf32>
    %15 = arith.maximumf %13, %14 : vector<8x256xf32>
    %16 = arith.truncf %15 : vector<8x256xf32> to vector<8x256xbf16>
    %c0_12 = arith.constant 0 : index
    %c0_13 = arith.constant 0 : index
    %17 = vector.load %arg6[%c0_12, %c0_13] : memref<256x128xbf16, #tpu.memory_space<vmem>>, vector<256x128xbf16>
    %cst_14 = arith.constant dense<0.000000e+00> : vector<8x128xf32>
    %18 = tpu.matmul %16, %17, %cst_14 {dimension_numbers = #tpu.dot_dimension_numbers<[1], [0], [0], [1], [0, 0, 1, 1], [], []>} : vector<8x256xbf16>, vector<256x128xbf16>, vector<8x128xf32> -> vector<8x128xf32>
    %c0_15 = arith.constant 0 : index
    %c0_16 = arith.constant 0 : index
    %19 = vector.load %arg7[%c0_15, %c0_16] : memref<1x128xf32, #tpu.memory_space<vmem>>, vector<1x128xf32>
    %20 = vector.broadcast %19 : vector<1x128xf32> to vector<8x128xf32>
    %21 = arith.addf %18, %20 : vector<8x128xf32>
    %cst_17 = arith.constant dense<0xFF800000> : vector<8xf32>
    %22 = vector.multi_reduction <maximumf>, %21, %cst_17 [1] : vector<8x128xf32> to vector<8xf32>
    %23 = vector.shape_cast %22 : vector<8xf32> to vector<8x1xf32>
    %24 = vector.broadcast %23 : vector<8x1xf32> to vector<8x128xf32>
    %25 = arith.subf %21, %24 : vector<8x128xf32>
    %26 = math.exp %25 : vector<8x128xf32>
    %cst_18 = arith.constant dense<0.000000e+00> : vector<8xf32>
    %27 = vector.multi_reduction <add>, %26, %cst_18 [1] : vector<8x128xf32> to vector<8xf32>
    %28 = vector.shape_cast %27 : vector<8xf32> to vector<8x1xf32>
    %29 = math.log %28 : vector<8x1xf32>
    %30 = vector.broadcast %29 : vector<8x1xf32> to vector<8x128xf32>
    %31 = arith.subf %25, %30 : vector<8x128xf32>
    %c0_19 = arith.constant 0 : index
    %c0_20 = arith.constant 0 : index
    %32 = vector.load %arg8[%c0_19, %c0_20] : memref<8x128xf32, #tpu.memory_space<vmem>>, vector<8x128xf32>
    tpu.vector_store %arg8[%c0_19, %c0_20], %31 {strides = array<i32>} : memref<8x128xf32, #tpu.memory_space<vmem>>, vector<8x128xf32>,
    return
  }
  func.func @transform_0(%arg0: i32) -> (i32, i32) {
    %c0_i32 = arith.constant 0 : i32
    %c0_i32_0 = arith.constant 0 : i32
    return %arg0, %c0_i32 : i32, i32
  }
  func.func @transform_1(%arg0: i32) -> (i32, i32) {
    %c0_i32 = arith.constant 0 : i32
    %c0_i32_0 = arith.constant 0 : i32
    %c0_i32_1 = arith.constant 0 : i32
    return %c0_i32, %c0_i32_0 : i32, i32
  }
  func.func @transform_2(%arg0: i32) -> (i32, i32) {
    %c0_i32 = arith.constant 0 : i32
    %c0_i32_0 = arith.constant 0 : i32
    %c0_i32_1 = arith.constant 0 : i32
    return %c0_i32, %c0_i32_0 : i32, i32
  }
  func.func @transform_3(%arg0: i32) -> (i32, i32) {
    %c0_i32 = arith.constant 0 : i32
    %c0_i32_0 = arith.constant 0 : i32
    %c0_i32_1 = arith.constant 0 : i32
    return %c0_i32, %c0_i32_0 : i32, i32
  }
  func.func @transform_4(%arg0: i32) -> (i32, i32) {
    %c0_i32 = arith.constant 0 : i32
    %c0_i32_0 = arith.constant 0 : i32
    %c0_i32_1 = arith.constant 0 : i32
    return %c0_i32, %c0_i32_0 : i32, i32
  }
  func.func @transform_5(%arg0: i32) -> (i32, i32) {
    %c0_i32 = arith.constant 0 : i32
    %c0_i32_0 = arith.constant 0 : i32
    %c0_i32_1 = arith.constant 0 : i32
    return %c0_i32, %c0_i32_0 : i32, i32
  }
  func.func @transform_6(%arg0: i32) -> (i32, i32) {
    %c0_i32 = arith.constant 0 : i32
    %c0_i32_0 = arith.constant 0 : i32
    %c0_i32_1 = arith.constant 0 : i32
    return %c0_i32, %c0_i32_0 : i32, i32
  }
  func.func @transform_7(%arg0: i32) -> (i32, i32) {
    %c0_i32 = arith.constant 0 : i32
    %c0_i32_0 = arith.constant 0 : i32
    return %arg0, %c0_i32 : i32, i32
  }
}

</mosaic_0001>

<bundles_post_ra>
// kernel: tpu_custom_call.1
= control target key start
LH: loop header
LB: loop body
LE: loop exit
PB: predicated region body
PF: predicated region fallthrough
CT: control target
= control target key end

     0   :  { %12 = vsyncpa [#allocation3], 0  ;;  %s3252_s0 = inlined_call_operand.hbm [shape: bf16[8,768], index: 0, kind: input, shape index: {}]   ;;  %s3253_s1 = inlined_call_operand.hbm [shape: bf16[768,512], index: 1, kind: input, shape index: {}]   ;;  %s3254_s2 = inlined_call_operand.vmem [shape: f32[1,512], index: 2, kind: input, shape index: {}]   ;;  %s3255_s3 = inlined_call_operand.hbm [shape: bf16[512,256], index: 3, kind: input, shape index: {}]   ;;  %s3256_s4 = inlined_call_operand.vmem [shape: f32[1,256], index: 4, kind: input, shape index: {}]   ;;  %s3257_s5 = inlined_call_operand.hbm [shape: bf16[256,128], index: 5, kind: input, shape index: {}]   ;;  %s3258_s6 = inlined_call_operand.vmem [shape: f32[1,128], index: 6, kind: input, shape index: {}]   ;;  %s3259_s7 = inlined_call_operand.hbm [shape: f32[8,128], index: 7, kind: output, shape index: {}]  }
   0x1   :  { %13 = vsyncpa [#allocation6], 0 }
   0x2   :  { %14 = vsyncpa [#allocation9], 0 }
   0x3   :  { %15 = vsyncpa [#allocation4], 0  ;;  %s3082_s24 = smov [#allocation5]   ;;  %s2964_s28 = scalar_lea.hbm %s3253_s1, 24576 }
   0x4   :  { %s31_s25 = sshll.u32 %s3082_s24, 4  ;;  %p2965_p0 = scmp.ne.s32.totalorder %s3253_s1, %s2964_s28  ;;  %s32_s25 = int_to_ptr.vmem [resolvable:$true] %s31_s25 }
   0x5   :  { %p2968_p1 = scmp.lt.u32.totalorder %s2964_s28, %s3253_s1 }
   0x7   :  { %p2970_p2 = pnand %p2968_p1, %p2965_p0 }
   0x9   :  { %2973 = shalt.err (!%p2970_p2)
}
   0xa   :  { %s2974_s10 = scalar_lea.vmem %s32_s25, 24576  ;;  %p2979_p4 = scmp.lt.s32.totalorder %s32_s25, %s32_s25 }
   0xb   :  { %p2975_p3 = scmp.ne.s32.totalorder %s32_s25, %s2974_s10  ;;  %p2980_p5 = scmp.lt.s32.totalorder %s2974_s10, %s2974_s10 }
   0xd   :  { %p2981_p6 = por %p2980_p5, %p2979_p4 }
   0xf   :  { %p2982_p7 = pnand %p2981_p6, %p2975_p3 }
  0x11   :  { %2985 = shalt.err (!%p2982_p7)
}
  0x12   :  { %s3083_s11 = smov 256   ;;  %s3084_s12 = smov 16  }
  0x13   :  { %37 = dma.hbm_to_vmem [thread:$0]  %s3253_s1, 24576, %s32_s25, [#allocation6], %s3083_s11, %s3083_s11, %s3084_s12  }
  0x14   :  { %s3085_s15 = smov [#allocation2]   ;;  %s3086_s17 = smov [#allocation7]  }
  0x15   :  { %s22_s16 = sshll.u32 %s3085_s15, 4  ;;  %s45_s18 = sshll.u32 %s3086_s17, 4  ;;  %s23_s16 = int_to_ptr.vmem [resolvable:$true] %s22_s16  ;;  %s46_s18 = int_to_ptr.vmem [resolvable:$true] %s45_s18 }
  0x16   :  { %s2986_s21 = scalar_lea.hbm %s3252_s0, 384 }
  0x17   :  { %p2987_p8 = scmp.ne.s32.totalorder %s3252_s0, %s2986_s21  ;;  %p2990_p9 = scmp.lt.u32.totalorder %s2986_s21, %s3252_s0 }
  0x19   :  { %p2992_p10 = pnand %p2990_p9, %p2987_p8 }
  0x1b   :  { %2995 = shalt.err (!%p2992_p10)
}
  0x1c   :  { %s2996_s1 = scalar_lea.vmem %s23_s16, 384  ;;  %p3001_p12 = scmp.lt.s32.totalorder %s23_s16, %s23_s16 }
  0x1d   :  { %p2997_p11 = scmp.ne.s32.totalorder %s23_s16, %s2996_s1  ;;  %p3002_p13 = scmp.lt.s32.totalorder %s2996_s1, %s2996_s1 }
  0x1f   :  { %p3003_p0 = por %p3002_p13, %p3001_p12 }
  0x21   :  { %p3004_p1 = pnand %p3003_p0, %p2997_p11 }
  0x23   :  { %3007 = shalt.err (!%p3004_p1)
}
  0x24   :  { %25 = dma.hbm_to_vmem [thread:$0]  %s3252_s0, 384, %s23_s16, [#allocation3]  }
  0x25   :  { %s3008_s30 = scalar_lea.hbm %s3255_s3, 8192 }
  0x26   :  { %p3009_p2 = scmp.ne.s32.totalorder %s3255_s3, %s3008_s30  ;;  %p3012_p3 = scmp.lt.u32.totalorder %s3008_s30, %s3255_s3 }
  0x28   :  { %p3014_p4 = pnand %p3012_p3, %p3009_p2 }
  0x2a   :  { %3017 = shalt.err (!%p3014_p4)
}
  0x2b   :  { %s3018_s12 = scalar_lea.vmem %s46_s18, 8192  ;;  %p3023_p6 = scmp.lt.s32.totalorder %s46_s18, %s46_s18 }
  0x2c   :  { %p3019_p5 = scmp.ne.s32.totalorder %s46_s18, %s3018_s12  ;;  %p3024_p7 = scmp.lt.s32.totalorder %s3018_s12, %s3018_s12 }
  0x2e   :  { %p3025_p8 = por %p3024_p7, %p3023_p6 }
  0x30   :  { %p3026_p9 = pnand %p3025_p8, %p3019_p5 }
  0x32   :  { %3029 = shalt.err (!%p3026_p9)
}
  0x33   :  { %s3087_s0 = smov 128   ;;  %s3088_s13 = smov 8  }
  0x34   :  { %51 = dma.hbm_to_vmem [thread:$0]  %s3255_s3, 8192, %s46_s18, [#allocation6], %s3087_s0, %s3087_s0, %s3088_s13  }
  0x35   :  { %s3089_s16 = smov [#allocation8]   ;;  %s3030_s21 = scalar_lea.hbm %s3257_s5, 2048 }
  0x36   :  { %s59_s17 = sshll.u32 %s3089_s16, 4  ;;  %p3031_p10 = scmp.ne.s32.totalorder %s3257_s5, %s3030_s21  ;;  %s60_s17 = int_to_ptr.vmem [resolvable:$true] %s59_s17 }
  0x37   :  { %p3034_p11 = scmp.lt.u32.totalorder %s3030_s21, %s3257_s5 }
  0x39   :  { %p3036_p12 = pnand %p3034_p11, %p3031_p10 }
  0x3b   :  { %3039 = shalt.err (!%p3036_p12)
}
  0x3c   :  { %s3040_s1 = scalar_lea.vmem %s60_s17, 2048  ;;  %p3045_p0 = scmp.lt.s32.totalorder %s60_s17, %s60_s17 }
  0x3d   :  { %p3041_p13 = scmp.ne.s32.totalorder %s60_s17, %s3040_s1  ;;  %p3046_p1 = scmp.lt.s32.totalorder %s3040_s1, %s3040_s1 }
  0x3f   :  { %p3047_p2 = por %p3046_p1, %p3045_p0 }
  0x41   :  { %p3048_p3 = pnand %p3047_p2, %p3041_p13 }
  0x43   :  { %3051 = shalt.err (!%p3048_p3)
}
  0x44   :  { %s3090_s3 = smov 64   ;;  %s3091_s18 = smov 4  }
  0x45   :  { %65 = dma.hbm_to_vmem [thread:$0]  %s3257_s5, 2048, %s60_s17, [#allocation9], %s3090_s3, %s3090_s3, %s3091_s18  }
  0x46   :  { %3074 = dma.done.wait [#allocation3], 384  }
  0x47   :  { %3075 = vsyncadd [#allocation3], 4294966912 }
  0x48   :  { %3076 = dma.done.wait [#allocation6], 32768  }
  0x49   :  { %3077 = vsyncadd [#allocation6], 4294934528 }
  0x4a   :  { %3078 = dma.done.wait [#allocation9], 2048  }
  0x4b   :  { %3079 = vsyncadd [#allocation9], 4294965248  ;;  %v2554_v0 = vld [vmem:[#allocation5 + $0x4] ss:$16 sps:$4 sm:$0xff]   ;;  %v2558_v2 = vld [vmem:[#allocation5] ss:$16 sps:$4 sm:$0xff]  }
  0x4c   :  { %v2556_v1 = vld [vmem:[#allocation5 + $0x204] ss:$16 sps:$4 sm:$0xff]   ;;  %1279 = vmatprep.subr.bf16.mxu1 %v2554_v0  ;;  %v2559_v3 = vld [vmem:[#allocation5 + $0x200] ss:$16 sps:$4 sm:$0xff]   ;;  %v81_v46 = vld [vmem:[#allocation2] sm:$0xff]  ;;  %s3092_s8 = smov [#allocation10]  }
  0x4d   :  { %1320 = vmatprep.subr.bf16.mxu0 %v2556_v1  ;;  %v2560_v4 = vld [vmem:[#allocation5 + $0x24] ss:$16 sps:$4 sm:$0xff]   ;;  %1280 = vmatpush1.bf16.msra.mxu1 %v2558_v2  ;;  %v2564_v6 = vld [vmem:[#allocation5 + $0x20] ss:$16 sps:$4 sm:$0xff]   ;;  %v3181_v47 = vcombine.high %v81_v46, %v81_v46  ;;  %s2207_s9 = sshll.u32 %s3092_s8, 4  ;;  %s2208_s9 = int_to_ptr.vmem [resolvable:$true] %s2207_s9 }
  0x4e   :  { %1321 = vmatpush1.bf16.msra.mxu0 %v2559_v3  ;;  %v2562_v5 = vld [vmem:[#allocation5 + $0x224] ss:$16 sps:$4 sm:$0xff]   ;;  %1281 = vmatprep.subr.bf16.mxu1 %v2560_v4  ;;  %v2565_v7 = vld [vmem:[#allocation5 + $0x220] ss:$16 sps:$4 sm:$0xff]   ;;  %p3057_p5 = scmp.lt.s32.totalorder %s2208_s9, %s2208_s9 }
  0x4f   :  { %1322 = vmatprep.subr.bf16.mxu0 %v2562_v5  ;;  %v2566_v8 = vld [vmem:[#allocation5 + $0x44] ss:$16 sps:$4 sm:$0xff]   ;;  %v2570_v10 = vld [vmem:[#allocation5 + $0x40] ss:$16 sps:$4 sm:$0xff]   ;;  %1311 = vmatprep.mubr.bf16.mxu1 %v3181_v47  ;;  %v2659_v5 = vld [vmem:[#allocation5 + $0xc] ss:$16 sps:$4 sm:$0xff]  }
  0x50   :  { %v2568_v9 = vld [vmem:[#allocation5 + $0x244] ss:$16 sps:$4 sm:$0xff]   ;;  %v2571_v11 = vld [vmem:[#allocation5 + $0x240] ss:$16 sps:$4 sm:$0xff]  }
  0x51   :  { %1282 = vmatpush1.bf16.msra.mxu1 %v2564_v6  ;;  %v2572_v12 = vld [vmem:[#allocation5 + $0x64] ss:$16 sps:$4 sm:$0xff]   ;;  %v2576_v14 = vld [vmem:[#allocation5 + $0x60] ss:$16 sps:$4 sm:$0xff]   ;;  %v3187_v6 = vcombine.low %v81_v46, %v81_v46 }
  0x52   :  { %1323 = vmatpush1.bf16.msra.mxu0 %v2565_v7  ;;  %1283 = vmatprep.subr.bf16.mxu1 %v2566_v8  ;;  %v2574_v13 = vld [vmem:[#allocation5 + $0x264] ss:$16 sps:$4 sm:$0xff]   ;;  %v2577_v15 = vld [vmem:[#allocation5 + $0x260] ss:$16 sps:$4 sm:$0xff]  }
  0x53   :  { %1324 = vmatprep.subr.bf16.mxu0 %v2568_v9  ;;  %v2578_v16 = vld [vmem:[#allocation5 + $0x84] ss:$16 sps:$4 sm:$0xff]   ;;  %v2582_v18 = vld [vmem:[#allocation5 + $0x80] ss:$16 sps:$4 sm:$0xff]   ;;  %v2657_v9 = vld [vmem:[#allocation5 + $0x8] ss:$16 sps:$4 sm:$0xff]  }
  0x54   :  { %v2580_v17 = vld [vmem:[#allocation5 + $0x284] ss:$16 sps:$4 sm:$0xff]   ;;  %v2583_v19 = vld [vmem:[#allocation5 + $0x280] ss:$16 sps:$4 sm:$0xff]  }
  0x55   :  { %1284 = vmatpush1.bf16.msra.mxu1 %v2570_v10  ;;  %v2584_v20 = vld [vmem:[#allocation5 + $0xa4] ss:$16 sps:$4 sm:$0xff]   ;;  %v2588_v22 = vld [vmem:[#allocation5 + $0xa0] ss:$16 sps:$4 sm:$0xff]  }
  0x56   :  { %1325 = vmatpush1.bf16.msra.mxu0 %v2571_v11  ;;  %1285 = vmatprep.subr.bf16.mxu1 %v2572_v12  ;;  %v2586_v21 = vld [vmem:[#allocation5 + $0x2a4] ss:$16 sps:$4 sm:$0xff]   ;;  %v2589_v23 = vld [vmem:[#allocation5 + $0x2a0] ss:$16 sps:$4 sm:$0xff]   ;;  %v2665_v11 = vld [vmem:[#allocation5 + $0x2c] ss:$16 sps:$4 sm:$0xff]  }
  0x57   :  { %1326 = vmatprep.subr.bf16.mxu0 %v2574_v13  ;;  %v2590_v24 = vld [vmem:[#allocation5 + $0xc4] ss:$16 sps:$4 sm:$0xff]   ;;  %v2594_v26 = vld [vmem:[#allocation5 + $0xc0] ss:$16 sps:$4 sm:$0xff]   ;;  %v2663_v13 = vld [vmem:[#allocation5 + $0x28] ss:$16 sps:$4 sm:$0xff]  }
  0x58   :  { %v2592_v25 = vld [vmem:[#allocation5 + $0x2c4] ss:$16 sps:$4 sm:$0xff]   ;;  %v2595_v27 = vld [vmem:[#allocation5 + $0x2c0] ss:$16 sps:$4 sm:$0xff]  }
  0x59   :  { %1286 = vmatpush1.bf16.msra.mxu1 %v2576_v14  ;;  %v2596_v28 = vld [vmem:[#allocation5 + $0xe4] ss:$16 sps:$4 sm:$0xff]   ;;  %v2600_v30 = vld [vmem:[#allocation5 + $0xe0] ss:$16 sps:$4 sm:$0xff]  }
  0x5a   :  { %1327 = vmatpush1.bf16.msra.mxu0 %v2577_v15  ;;  %1287 = vmatprep.subr.bf16.mxu1 %v2578_v16  ;;  %v2598_v29 = vld [vmem:[#allocation5 + $0x2e4] ss:$16 sps:$4 sm:$0xff]   ;;  %v2601_v31 = vld [vmem:[#allocation5 + $0x2e0] ss:$16 sps:$4 sm:$0xff]   ;;  %v2671_v15 = vld [vmem:[#allocation5 + $0x4c] ss:$16 sps:$4 sm:$0xff]  }
  0x5b   :  { %1328 = vmatprep.subr.bf16.mxu0 %v2580_v17  ;;  %v2602_v32 = vld [vmem:[#allocation5 + $0x104] ss:$16 sps:$4 sm:$0xff]   ;;  %v2606_v34 = vld [vmem:[#allocation5 + $0x100] ss:$16 sps:$4 sm:$0xff]   ;;  %v2669_v17 = vld [vmem:[#allocation5 + $0x48] ss:$16 sps:$4 sm:$0xff]  }
  0x5c   :  { %v2604_v33 = vld [vmem:[#allocation5 + $0x304] ss:$16 sps:$4 sm:$0xff]   ;;  %v2607_v35 = vld [vmem:[#allocation5 + $0x300] ss:$16 sps:$4 sm:$0xff]  }
  0x5d   :  { %1288 = vmatpush1.bf16.msra.mxu1 %v2582_v18  ;;  %v2608_v36 = vld [vmem:[#allocation5 + $0x124] ss:$16 sps:$4 sm:$0xff]   ;;  %v2612_v38 = vld [vmem:[#allocation5 + $0x120] ss:$16 sps:$4 sm:$0xff]  }
  0x5e   :  { %1329 = vmatpush1.bf16.msra.mxu0 %v2583_v19  ;;  %1289 = vmatprep.subr.bf16.mxu1 %v2584_v20  ;;  %v2610_v37 = vld [vmem:[#allocation5 + $0x324] ss:$16 sps:$4 sm:$0xff]   ;;  %v2613_v39 = vld [vmem:[#allocation5 + $0x320] ss:$16 sps:$4 sm:$0xff]   ;;  %v2677_v19 = vld [vmem:[#allocation5 + $0x6c] ss:$16 sps:$4 sm:$0xff]  }
  0x5f   :  { %1330 = vmatprep.subr.bf16.mxu0 %v2586_v21  ;;  %v2614_v40 = vld [vmem:[#allocation5 + $0x144] ss:$16 sps:$4 sm:$0xff]   ;;  %v2618_v42 = vld [vmem:[#allocation5 + $0x140] ss:$16 sps:$4 sm:$0xff]   ;;  %v2675_v21 = vld [vmem:[#allocation5 + $0x68] ss:$16 sps:$4 sm:$0xff]  }
  0x60   :  { %v2616_v41 = vld [vmem:[#allocation5 + $0x344] ss:$16 sps:$4 sm:$0xff]   ;;  %v2619_v43 = vld [vmem:[#allocation5 + $0x340] ss:$16 sps:$4 sm:$0xff]  }
  0x61   :  { %1290 = vmatpush1.bf16.msra.mxu1 %v2588_v22  ;;  %v2620_v44 = vld [vmem:[#allocation5 + $0x164] ss:$16 sps:$4 sm:$0xff]   ;;  %v2624_v49 = vld [vmem:[#allocation5 + $0x160] ss:$16 sps:$4 sm:$0xff]  }
  0x62   :  { %1331 = vmatpush1.bf16.msra.mxu0 %v2589_v23  ;;  %1291 = vmatprep.subr.bf16.mxu1 %v2590_v24  ;;  %v2622_v45 = vld [vmem:[#allocation5 + $0x364] ss:$16 sps:$4 sm:$0xff]   ;;  %v2625_v50 = vld [vmem:[#allocation5 + $0x360] ss:$16 sps:$4 sm:$0xff]   ;;  %v2683_v23 = vld [vmem:[#allocation5 + $0x8c] ss:$16 sps:$4 sm:$0xff]  }
  0x63   :  { %1332 = vmatprep.subr.bf16.mxu0 %v2592_v25  ;;  %v82_v48 = vld [vmem:[#allocation2 + $0x8] sm:$0xff]  ;;  %v2681_v25 = vld [vmem:[#allocation5 + $0x88] ss:$16 sps:$4 sm:$0xff]  }
  0x64   :  { %v3183_v51 = vcombine.high %v82_v48, %v82_v48  ;;  %v2626_v52 = vld [vmem:[#allocation5 + $0x184] ss:$16 sps:$4 sm:$0xff]   ;;  %v2630_v54 = vld [vmem:[#allocation5 + $0x180] ss:$16 sps:$4 sm:$0xff]   ;;  %v3189_v7 = vcombine.low %v82_v48, %v82_v48 }
  0x65   :  { %1292 = vmatpush1.bf16.msra.mxu1 %v2594_v26  ;;  %v2628_v53 = vld [vmem:[#allocation5 + $0x384] ss:$16 sps:$4 sm:$0xff]   ;;  %v2631_v55 = vld [vmem:[#allocation5 + $0x380] ss:$16 sps:$4 sm:$0xff]  }
  0x66   :  { %1333 = vmatpush1.bf16.msra.mxu0 %v2595_v27  ;;  %1293 = vmatprep.subr.bf16.mxu1 %v2596_v28  ;;  %v2632_v56 = vld [vmem:[#allocation5 + $0x1a4] ss:$16 sps:$4 sm:$0xff]   ;;  %v2636_v58 = vld [vmem:[#allocation5 + $0x1a0] ss:$16 sps:$4 sm:$0xff]   ;;  %v2689_v27 = vld [vmem:[#allocation5 + $0xac] ss:$16 sps:$4 sm:$0xff]  }
  0x67   :  { %1334 = vmatprep.subr.bf16.mxu0 %v2598_v29  ;;  %1352 = vmatprep.mubr.bf16.mxu0 %v3183_v51  ;;  %v2634_v57 = vld [vmem:[#allocation5 + $0x3a4] ss:$16 sps:$4 sm:$0xff]   ;;  %v2637_v59 = vld [vmem:[#allocation5 + $0x3a0] ss:$16 sps:$4 sm:$0xff]   ;;  %v2687_v29 = vld [vmem:[#allocation5 + $0xa8] ss:$16 sps:$4 sm:$0xff]  }
  0x68   :  { %v2638_v60 = vld [vmem:[#allocation5 + $0x1c4] ss:$16 sps:$4 sm:$0xff]   ;;  %v2642_v62 = vld [vmem:[#allocation5 + $0x1c0] ss:$16 sps:$4 sm:$0xff]  }
  0x69   :  { %1294 = vmatpush1.bf16.msra.mxu1 %v2600_v30  ;;  %v2640_v61 = vld [vmem:[#allocation5 + $0x3c4] ss:$16 sps:$4 sm:$0xff]   ;;  %v2643_v63 = vld [vmem:[#allocation5 + $0x3c0] ss:$16 sps:$4 sm:$0xff]  }
  0x6a   :  { %1335 = vmatpush1.bf16.msra.mxu0 %v2601_v31  ;;  %1295 = vmatprep.subr.bf16.mxu1 %v2602_v32  ;;  %v2644_v0 = vld [vmem:[#allocation5 + $0x1e4] ss:$16 sps:$4 sm:$0xff]   ;;  %v2648_v2 = vld [vmem:[#allocation5 + $0x1e0] ss:$16 sps:$4 sm:$0xff]   ;;  %v2695_v31 = vld [vmem:[#allocation5 + $0xcc] ss:$16 sps:$4 sm:$0xff]  }
  0x6b   :  { %1336 = vmatprep.subr.bf16.mxu0 %v2604_v33  ;;  %v2646_v1 = vld [vmem:[#allocation5 + $0x3e4] ss:$16 sps:$4 sm:$0xff]   ;;  %v2649_v3 = vld [vmem:[#allocation5 + $0x3e0] ss:$16 sps:$4 sm:$0xff]   ;;  %v3194_v32 = vld [vmem:[#allocation2 + $0x10] sm:$0xff] }
  0x6c   :  { %v2656_v4 = vld [vmem:[#allocation5 + $0x404] ss:$16 sps:$4 sm:$0xff]   ;;  %v2654_v8 = vld [vmem:[#allocation5 + $0x400] ss:$16 sps:$4 sm:$0xff]  }
  0x6d   :  { %1296 = vmatpush1.bf16.msra.mxu1 %v2606_v34  ;;  %v2662_v10 = vld [vmem:[#allocation5 + $0x424] ss:$16 sps:$4 sm:$0xff]   ;;  %v2660_v12 = vld [vmem:[#allocation5 + $0x420] ss:$16 sps:$4 sm:$0xff]   ;;  %v3198_v34 = vcombine.high %v3194_v32, %v3194_v32 }
  0x6e   :  { %1337 = vmatpush1.bf16.msra.mxu0 %v2607_v35  ;;  %1297 = vmatprep.subr.bf16.mxu1 %v2608_v36  ;;  %v2668_v14 = vld [vmem:[#allocation5 + $0x444] ss:$16 sps:$4 sm:$0xff]   ;;  %v2666_v16 = vld [vmem:[#allocation5 + $0x440] ss:$16 sps:$4 sm:$0xff]   ;;  %v2693_v35 = vld [vmem:[#allocation5 + $0xc8] ss:$16 sps:$4 sm:$0xff]  }
  0x6f   :  { %1338 = vmatprep.subr.bf16.mxu0 %v2610_v37  ;;  %v2674_v18 = vld [vmem:[#allocation5 + $0x464] ss:$16 sps:$4 sm:$0xff]   ;;  %v2672_v20 = vld [vmem:[#allocation5 + $0x460] ss:$16 sps:$4 sm:$0xff]   ;;  %v2701_v37 = vld [vmem:[#allocation5 + $0xec] ss:$16 sps:$4 sm:$0xff]  }
  0x70   :  { %v2680_v22 = vld [vmem:[#allocation5 + $0x484] ss:$16 sps:$4 sm:$0xff]   ;;  %v2678_v24 = vld [vmem:[#allocation5 + $0x480] ss:$16 sps:$4 sm:$0xff]  }
  0x71   :  { %1298 = vmatpush1.bf16.msra.mxu1 %v2612_v38  ;;  %v2686_v26 = vld [vmem:[#allocation5 + $0x4a4] ss:$16 sps:$4 sm:$0xff]   ;;  %v2684_v28 = vld [vmem:[#allocation5 + $0x4a0] ss:$16 sps:$4 sm:$0xff]  }
  0x72   :  { %1339 = vmatpush1.bf16.msra.mxu0 %v2613_v39  ;;  %1299 = vmatprep.subr.bf16.mxu1 %v2614_v40  ;;  %v2692_v30 = vld [vmem:[#allocation5 + $0x4c4] ss:$16 sps:$4 sm:$0xff]   ;;  %v2690_v33 = vld [vmem:[#allocation5 + $0x4c0] ss:$16 sps:$4 sm:$0xff]   ;;  %v2699_v39 = vld [vmem:[#allocation5 + $0xe8] ss:$16 sps:$4 sm:$0xff]  }
  0x73   :  { %1340 = vmatprep.subr.bf16.mxu0 %v2616_v41  ;;  %v2698_v36 = vld [vmem:[#allocation5 + $0x4e4] ss:$16 sps:$4 sm:$0xff]   ;;  %v2696_v38 = vld [vmem:[#allocation5 + $0x4e0] ss:$16 sps:$4 sm:$0xff]   ;;  %v2707_v41 = vld [vmem:[#allocation5 + $0x10c] ss:$16 sps:$4 sm:$0xff]  }
  0x74   :  { %v2704_v40 = vld [vmem:[#allocation5 + $0x504] ss:$16 sps:$4 sm:$0xff]   ;;  %v2708_v46 = vld [vmem:[#allocation5 + $0x520] ss:$16 sps:$4 sm:$0xff]  }
  0x75   :  { %1300 = vmatpush1.bf16.msra.mxu1 %v2618_v42  ;;  %v2702_v42 = vld [vmem:[#allocation5 + $0x500] ss:$16 sps:$4 sm:$0xff]   ;;  %v2716_v48 = vld [vmem:[#allocation5 + $0x544] ss:$16 sps:$4 sm:$0xff]  }
  0x76   :  { %1341 = vmatpush1.bf16.msra.mxu0 %v2619_v43  ;;  %1301 = vmatprep.subr.bf16.mxu1 %v2620_v44  ;;  %v2705_v43 = vld [vmem:[#allocation5 + $0x108] ss:$16 sps:$4 sm:$0xff]   ;;  %v2710_v44 = vld [vmem:[#allocation5 + $0x524] ss:$16 sps:$4 sm:$0xff]  }
  0x77   :  { %1342 = vmatprep.subr.bf16.mxu0 %v2622_v45  ;;  %v2713_v45 = vld [vmem:[#allocation5 + $0x12c] ss:$16 sps:$4 sm:$0xff]  }
  0x79   :  { %1302 = vmatpush1.bf16.msra.mxu1 %v2624_v49  ;;  %v2719_v49 = vld [vmem:[#allocation5 + $0x14c] ss:$16 sps:$4 sm:$0xff]  }
  0x7a   :  { %1343 = vmatpush1.bf16.msra.mxu0 %v2625_v50  ;;  %1303 = vmatprep.subr.bf16.mxu1 %v2626_v52  ;;  %v2714_v50 = vld [vmem:[#allocation5 + $0x540] ss:$16 sps:$4 sm:$0xff]   ;;  %v2717_v52 = vld [vmem:[#allocation5 + $0x148] ss:$16 sps:$4 sm:$0xff]  }
  0x7b   :  { %1344 = vmatprep.subr.bf16.mxu0 %v2628_v53  ;;  %v2722_v53 = vld [vmem:[#allocation5 + $0x564] ss:$16 sps:$4 sm:$0xff]  }
  0x7d   :  { %1304 = vmatpush1.bf16.msra.mxu1 %v2630_v54  ;;  %v2725_v54 = vld [vmem:[#allocation5 + $0x16c] ss:$16 sps:$4 sm:$0xff]  }
  0x7e   :  { %1345 = vmatpush1.bf16.msra.mxu0 %v2631_v55  ;;  %1305 = vmatprep.subr.bf16.mxu1 %v2632_v56  ;;  %v2720_v55 = vld [vmem:[#allocation5 + $0x560] ss:$16 sps:$4 sm:$0xff]   ;;  %v2723_v56 = vld [vmem:[#allocation5 + $0x168] ss:$16 sps:$4 sm:$0xff]  }
  0x7f   :  { %1346 = vmatprep.subr.bf16.mxu0 %v2634_v57  ;;  %v2728_v57 = vld [vmem:[#allocation5 + $0x584] ss:$16 sps:$4 sm:$0xff]  }
  0x81   :  { %1306 = vmatpush1.bf16.msra.mxu1 %v2636_v58  ;;  %v2731_v58 = vld [vmem:[#allocation5 + $0x18c] ss:$16 sps:$4 sm:$0xff]  }
  0x82   :  { %1347 = vmatpush1.bf16.msra.mxu0 %v2637_v59  ;;  %1307 = vmatprep.subr.bf16.mxu1 %v2638_v60  ;;  %v2726_v59 = vld [vmem:[#allocation5 + $0x580] ss:$16 sps:$4 sm:$0xff]   ;;  %v2729_v60 = vld [vmem:[#allocation5 + $0x188] ss:$16 sps:$4 sm:$0xff]  }
  0x83   :  { %1348 = vmatprep.subr.bf16.mxu0 %v2640_v61  ;;  %v2734_v61 = vld [vmem:[#allocation5 + $0x5a4] ss:$16 sps:$4 sm:$0xff]  }
  0x85   :  { %1308 = vmatpush1.bf16.msra.mxu1 %v2642_v62  ;;  %v2737_v62 = vld [vmem:[#allocation5 + $0x1ac] ss:$16 sps:$4 sm:$0xff]  }
  0x86   :  { %1349 = vmatpush1.bf16.msra.mxu0 %v2643_v63  ;;  %1309 = vmatprep.subr.bf16.mxu1 %v2644_v0  ;;  %v2732_v63 = vld [vmem:[#allocation5 + $0x5a0] ss:$16 sps:$4 sm:$0xff]   ;;  %v2735_v0 = vld [vmem:[#allocation5 + $0x1a8] ss:$16 sps:$4 sm:$0xff]  }
  0x87   :  { %1350 = vmatprep.subr.bf16.mxu0 %v2646_v1  ;;  %v2740_v1 = vld [vmem:[#allocation5 + $0x5c4] ss:$16 sps:$4 sm:$0xff]  }
  0x89   :  { %1310 = vmatpush1.bf16.msra.mxu1 %v2648_v2  ;;  %v2743_v2 = vld [vmem:[#allocation5 + $0x1cc] ss:$16 sps:$4 sm:$0xff]  }
  0x8a   :  { %1351 = vmatpush1.bf16.msra.mxu0 %v2649_v3  ;;  %1402 = vmatprep.subr.bf16.mxu1 %v2659_v5  ;;  %v2738_v3 = vld [vmem:[#allocation5 + $0x5c0] ss:$16 sps:$4 sm:$0xff]   ;;  %v2746_v5 = vld [vmem:[#allocation5 + $0x5e4] ss:$16 sps:$4 sm:$0xff]  }
  0x8b   :  { %1361 = vmatprep.subr.bf16.mxu0 %v2656_v4  ;;  %v2741_v4 = vld [vmem:[#allocation5 + $0x1c8] ss:$16 sps:$4 sm:$0xff]  }
  0x8c   :  { %1312 = vmatmul.mubr.bf16.vlgmr.msra.gmra.mrb[0].mxu1 %v3187_v6 }
  0x8d   :  { %1353 = vmatmul.mubr.bf16.vlgmr.msra.gmra.mrb[0].mxu0 %v3189_v7  ;;  %1403 = vmatpush1.bf16.msra.mxu1 %v2657_v9  ;;  %v2744_v9 = vld [vmem:[#allocation5 + $0x5e0] ss:$16 sps:$4 sm:$0xff]  }
  0x8e   :  { %1362 = vmatpush1.bf16.msra.mxu0 %v2654_v8  ;;  %1404 = vmatprep.subr.bf16.mxu1 %v2665_v11  ;;  %v2749_v8 = vld [vmem:[#allocation5 + $0x1ec] ss:$16 sps:$4 sm:$0xff]  }
  0x8f   :  { %1363 = vmatprep.subr.bf16.mxu0 %v2662_v10  ;;  %1434 = vmatprep.mubr.bf16.mxu1 %v3181_v47  ;;  %v2711_v47 = vld [vmem:[#allocation5 + $0x128] ss:$16 sps:$4 sm:$0xff]   ;;  %v2754_v11 = vld [vmem:[#allocation5 + $0x20c] ss:$16 sps:$4 sm:$0xff]  }
  0x90   :  { %1393 = vmatprep.mubr.bf16.mxu0 %v3198_v34  ;;  %v2747_v10 = vld [vmem:[#allocation5 + $0x1e8] ss:$16 sps:$4 sm:$0xff]  }
  0x91   :  { %1405 = vmatpush1.bf16.msra.mxu1 %v2663_v13  ;;  %v2752_v13 = vld [vmem:[#allocation5 + $0x208] ss:$16 sps:$4 sm:$0xff]  }
  0x92   :  { %1364 = vmatpush1.bf16.msra.mxu0 %v2660_v12  ;;  %1406 = vmatprep.subr.bf16.mxu1 %v2671_v15  ;;  %v3203_v12 = vcombine.low %v3194_v32, %v3194_v32  ;;  %v2755_v15 = vld [vmem:[#allocation5 + $0x228] ss:$16 sps:$4 sm:$0xff]  }
  0x93   :  { %1365 = vmatprep.subr.bf16.mxu0 %v2668_v14  ;;  %v2757_v14 = vld [vmem:[#allocation5 + $0x22c] ss:$16 sps:$4 sm:$0xff]   ;;  %v2776_v32 = vld [vmem:[#allocation5 + $0x308] ss:$16 sps:$4 sm:$0xff]  }
  0x95   :  { %1407 = vmatpush1.bf16.msra.mxu1 %v2669_v17  ;;  %v2758_v17 = vld [vmem:[#allocation5 + $0x248] ss:$16 sps:$4 sm:$0xff]  }
  0x96   :  { %1366 = vmatpush1.bf16.msra.mxu0 %v2666_v16  ;;  %1408 = vmatprep.subr.bf16.mxu1 %v2677_v19  ;;  %v2760_v16 = vld [vmem:[#allocation5 + $0x24c] ss:$16 sps:$4 sm:$0xff]   ;;  %v2761_v19 = vld [vmem:[#allocation5 + $0x268] ss:$16 sps:$4 sm:$0xff]  }
  0x97   :  { %1367 = vmatprep.subr.bf16.mxu0 %v2674_v18  ;;  %v2763_v18 = vld [vmem:[#allocation5 + $0x26c] ss:$16 sps:$4 sm:$0xff]  }
  0x99   :  { %1409 = vmatpush1.bf16.msra.mxu1 %v2675_v21  ;;  %v2764_v21 = vld [vmem:[#allocation5 + $0x288] ss:$16 sps:$4 sm:$0xff]  }
  0x9a   :  { %1368 = vmatpush1.bf16.msra.mxu0 %v2672_v20  ;;  %1410 = vmatprep.subr.bf16.mxu1 %v2683_v23  ;;  %v2766_v20 = vld [vmem:[#allocation5 + $0x28c] ss:$16 sps:$4 sm:$0xff]   ;;  %v2767_v23 = vld [vmem:[#allocation5 + $0x2a8] ss:$16 sps:$4 sm:$0xff]  }
  0x9b   :  { %1369 = vmatprep.subr.bf16.mxu0 %v2680_v22  ;;  %v2769_v22 = vld [vmem:[#allocation5 + $0x2ac] ss:$16 sps:$4 sm:$0xff]  }
  0x9d   :  { %1411 = vmatpush1.bf16.msra.mxu1 %v2681_v25  ;;  %v2848_v25 = vld [vmem:[#allocation7] ss:$8 sps:$4 sm:$0xff]  }
  0x9e   :  { %1370 = vmatpush1.bf16.msra.mxu0 %v2678_v24  ;;  %1412 = vmatprep.subr.bf16.mxu1 %v2689_v27  ;;  %v2772_v24 = vld [vmem:[#allocation5 + $0x2cc] ss:$16 sps:$4 sm:$0xff]  }
  0x9f   :  { %1371 = vmatprep.subr.bf16.mxu0 %v2686_v26  ;;  %v2850_v26 = vld [vmem:[#allocation7 + $0x4] ss:$8 sps:$4 sm:$0xff]   ;;  %v2853_v27 = vld [vmem:[#allocation7 + $0x14] ss:$8 sps:$4 sm:$0xff]  }
  0xa1   :  { %1413 = vmatpush1.bf16.msra.mxu1 %v2687_v29  ;;  %v2851_v29 = vld [vmem:[#allocation7 + $0x10] ss:$8 sps:$4 sm:$0xff]  }
  0xa2   :  { %1372 = vmatpush1.bf16.msra.mxu0 %v2684_v28  ;;  %1414 = vmatprep.subr.bf16.mxu1 %v2695_v31  ;;  %v2773_v28 = vld [vmem:[#allocation5 + $0x2e8] ss:$16 sps:$4 sm:$0xff]   ;;  %v2856_v31 = vld [vmem:[#allocation7 + $0x24] ss:$8 sps:$4 sm:$0xff]  }
  0xa3   :  { %1373 = vmatprep.subr.bf16.mxu0 %v2692_v30  ;;  %v2778_v30 = vld [vmem:[#allocation5 + $0x30c] ss:$16 sps:$4 sm:$0xff]  }
  0xa5   :  { %1415 = vmatpush1.bf16.msra.mxu1 %v2693_v35  ;;  %v2781_v35 = vld [vmem:[#allocation5 + $0x32c] ss:$16 sps:$4 sm:$0xff]  }
  0xa6   :  { %1374 = vmatpush1.bf16.msra.mxu0 %v2690_v33  ;;  %1416 = vmatprep.subr.bf16.mxu1 %v2701_v37  ;;  %v2854_v33 = vld [vmem:[#allocation7 + $0x20] ss:$8 sps:$4 sm:$0xff]  }
  0xa7   :  { %1375 = vmatprep.subr.bf16.mxu0 %v2698_v36  ;;  %v2859_v36 = vld [vmem:[#allocation7 + $0x34] ss:$8 sps:$4 sm:$0xff]   ;;  %v2779_v37 = vld [vmem:[#allocation5 + $0x328] ss:$16 sps:$4 sm:$0xff]  }
  0xa9   :  { %1417 = vmatpush1.bf16.msra.mxu1 %v2699_v39  ;;  %v2784_v39 = vld [vmem:[#allocation5 + $0x34c] ss:$16 sps:$4 sm:$0xff]  }
  0xaa   :  { %1376 = vmatpush1.bf16.msra.mxu0 %v2696_v38  ;;  %1418 = vmatprep.subr.bf16.mxu1 %v2707_v41  ;;  %v2857_v38 = vld [vmem:[#allocation7 + $0x30] ss:$8 sps:$4 sm:$0xff]  }
  0xab   :  { %1377 = vmatprep.subr.bf16.mxu0 %v2704_v40  ;;  %v2862_v40 = vld [vmem:[#allocation7 + $0x44] ss:$8 sps:$4 sm:$0xff]   ;;  %v2782_v41 = vld [vmem:[#allocation5 + $0x348] ss:$16 sps:$4 sm:$0xff]  }
  0xad   :  { %1419 = vmatpush1.bf16.msra.mxu1 %v2705_v43  ;;  %v2787_v43 = vld [vmem:[#allocation5 + $0x36c] ss:$16 sps:$4 sm:$0xff]  }
  0xae   :  { %1378 = vmatpush1.bf16.msra.mxu0 %v2702_v42  ;;  %1420 = vmatprep.subr.bf16.mxu1 %v2713_v45  ;;  %v2860_v42 = vld [vmem:[#allocation7 + $0x40] ss:$8 sps:$4 sm:$0xff]  }
  0xaf   :  { %1379 = vmatprep.subr.bf16.mxu0 %v2710_v44  ;;  %v2865_v44 = vld [vmem:[#allocation7 + $0x54] ss:$8 sps:$4 sm:$0xff]   ;;  %v2785_v45 = vld [vmem:[#allocation5 + $0x368] ss:$16 sps:$4 sm:$0xff]  }
  0xb1   :  { %1421 = vmatpush1.bf16.msra.mxu1 %v2711_v47  ;;  %v2790_v47 = vld [vmem:[#allocation5 + $0x38c] ss:$16 sps:$4 sm:$0xff]  }
  0xb2   :  { %1380 = vmatpush1.bf16.msra.mxu0 %v2708_v46  ;;  %1422 = vmatprep.subr.bf16.mxu1 %v2719_v49  ;;  %v2863_v46 = vld [vmem:[#allocation7 + $0x50] ss:$8 sps:$4 sm:$0xff]  }
  0xb3   :  { %1381 = vmatprep.subr.bf16.mxu0 %v2716_v48  ;;  %v2868_v48 = vld [vmem:[#allocation7 + $0x64] ss:$8 sps:$4 sm:$0xff]   ;;  %v2788_v49 = vld [vmem:[#allocation5 + $0x388] ss:$16 sps:$4 sm:$0xff]  }
  0xb5   :  { %1423 = vmatpush1.bf16.msra.mxu1 %v2717_v52  ;;  %v2793_v52 = vld [vmem:[#allocation5 + $0x3ac] ss:$16 sps:$4 sm:$0xff]  }
  0xb6   :  { %1382 = vmatpush1.bf16.msra.mxu0 %v2714_v50  ;;  %1424 = vmatprep.subr.bf16.mxu1 %v2725_v54  ;;  %v2866_v50 = vld [vmem:[#allocation7 + $0x60] ss:$8 sps:$4 sm:$0xff]  }
  0xb7   :  { %1383 = vmatprep.subr.bf16.mxu0 %v2722_v53  ;;  %v2871_v53 = vld [vmem:[#allocation7 + $0x74] ss:$8 sps:$4 sm:$0xff]   ;;  %v2791_v54 = vld [vmem:[#allocation5 + $0x3a8] ss:$16 sps:$4 sm:$0xff]  }
  0xb9   :  { %1425 = vmatpush1.bf16.msra.mxu1 %v2723_v56  ;;  %v2796_v56 = vld [vmem:[#allocation5 + $0x3cc] ss:$16 sps:$4 sm:$0xff]  }
  0xba   :  { %1384 = vmatpush1.bf16.msra.mxu0 %v2720_v55  ;;  %1426 = vmatprep.subr.bf16.mxu1 %v2731_v58  ;;  %v2869_v55 = vld [vmem:[#allocation7 + $0x70] ss:$8 sps:$4 sm:$0xff]  }
  0xbb   :  { %1385 = vmatprep.subr.bf16.mxu0 %v2728_v57  ;;  %v2874_v57 = vld [vmem:[#allocation7 + $0x84] ss:$8 sps:$4 sm:$0xff]   ;;  %v2794_v58 = vld [vmem:[#allocation5 + $0x3c8] ss:$16 sps:$4 sm:$0xff]  }
  0xbd   :  { %1427 = vmatpush1.bf16.msra.mxu1 %v2729_v60  ;;  %v2799_v60 = vld [vmem:[#allocation5 + $0x3ec] ss:$16 sps:$4 sm:$0xff]  }
  0xbe   :  { %1386 = vmatpush1.bf16.msra.mxu0 %v2726_v59  ;;  %1428 = vmatprep.subr.bf16.mxu1 %v2737_v62  ;;  %v2872_v59 = vld [vmem:[#allocation7 + $0x80] ss:$8 sps:$4 sm:$0xff]  }
  0xbf   :  { %1387 = vmatprep.subr.bf16.mxu0 %v2734_v61  ;;  %v2877_v61 = vld [vmem:[#allocation7 + $0x94] ss:$8 sps:$4 sm:$0xff]   ;;  %v2797_v62 = vld [vmem:[#allocation5 + $0x3e8] ss:$16 sps:$4 sm:$0xff]  }
  0xc1   :  { %1429 = vmatpush1.bf16.msra.mxu1 %v2735_v0  ;;  %v2802_v0 = vld [vmem:[#allocation5 + $0x40c] ss:$16 sps:$4 sm:$0xff]  }
  0xc2   :  { %1388 = vmatpush1.bf16.msra.mxu0 %v2732_v63  ;;  %1430 = vmatprep.subr.bf16.mxu1 %v2743_v2  ;;  %v2875_v63 = vld [vmem:[#allocation7 + $0x90] ss:$8 sps:$4 sm:$0xff]  }
  0xc3   :  { %1389 = vmatprep.subr.bf16.mxu0 %v2740_v1  ;;  %v2880_v1 = vld [vmem:[#allocation7 + $0xa4] ss:$8 sps:$4 sm:$0xff]   ;;  %v2800_v2 = vld [vmem:[#allocation5 + $0x408] ss:$16 sps:$4 sm:$0xff]  }
  0xc5   :  { %1431 = vmatpush1.bf16.msra.mxu1 %v2741_v4  ;;  %v2878_v4 = vld [vmem:[#allocation7 + $0xa0] ss:$8 sps:$4 sm:$0xff]  }
  0xc6   :  { %1390 = vmatpush1.bf16.msra.mxu0 %v2738_v3  ;;  %1432 = vmatprep.subr.bf16.mxu1 %v2749_v8  ;;  %v2805_v3 = vld [vmem:[#allocation5 + $0x42c] ss:$16 sps:$4 sm:$0xff]   ;;  %v2803_v8 = vld [vmem:[#allocation5 + $0x428] ss:$16 sps:$4 sm:$0xff]  }
  0xc7   :  { %1391 = vmatprep.subr.bf16.mxu0 %v2746_v5  ;;  %v2883_v5 = vld [vmem:[#allocation7 + $0xb4] ss:$8 sps:$4 sm:$0xff]  }
  0xc9   :  { %1433 = vmatpush1.bf16.msra.mxu1 %v2747_v10  ;;  %v2881_v10 = vld [vmem:[#allocation7 + $0xb0] ss:$8 sps:$4 sm:$0xff]  }
  0xca   :  { %1392 = vmatpush1.bf16.msra.mxu0 %v2744_v9  ;;  %1443 = vmatprep.subr.bf16.mxu1 %v2754_v11  ;;  %v2808_v9 = vld [vmem:[#allocation5 + $0x44c] ss:$16 sps:$4 sm:$0xff]  }
  0xcb   :  { %1929 = vmatprep.subr.bf16.mxu0 %v2850_v26  ;;  %v2886_v11 = vld [vmem:[#allocation7 + $0xc4] ss:$8 sps:$4 sm:$0xff]   ;;  %v2821_v26 = vld [vmem:[#allocation5 + $0x4e8] ss:$16 sps:$4 sm:$0xff]  }
  0xcc   :  { %1435 = vmatmul.mubr.bf16.vlgmr.msra.gmra.mrb[4].mxu1 %v3187_v6  ;;  %v2770_v6 = vld [vmem:[#allocation5 + $0x2c8] ss:$16 sps:$4 sm:$0xff]  }
  0xcd   :  { %1394 = vmatmul.mubr.bf16.vlgmr.msra.gmra.mrb[0].mxu0 %v3203_v12  ;;  %1444 = vmatpush1.bf16.msra.mxu1 %v2752_v13  ;;  %v2806_v13 = vld [vmem:[#allocation5 + $0x448] ss:$16 sps:$4 sm:$0xff]  }
  0xce   :  { %1475 = vmatprep.mubr.bf16.mxu1 %v3183_v51  ;;  %1445 = vmatprep.subr.bf16.mxu1 %v2757_v14  ;;  %v2775_v51 = vld [vmem:[#allocation5 + $0x2ec] ss:$16 sps:$4 sm:$0xff]  }
  0xcf   :  { %1930 = vmatpush1.bf16.msra.mxu0 %v2848_v25  ;;  %v2811_v14 = vld [vmem:[#allocation5 + $0x46c] ss:$16 sps:$4 sm:$0xff]   ;;  %v2893_v25 = vld [vmem:[#allocation7 + $0xf0] ss:$8 sps:$4 sm:$0xff]  }
  0xd0   :  { %1931 = vmatprep.subr.bf16.mxu0 %v2853_v27  ;;  %v2826_v27 = vld [vmem:[#allocation5 + $0x50c] ss:$16 sps:$4 sm:$0xff]  }
  0xd1   :  { %1446 = vmatpush1.bf16.msra.mxu1 %v2755_v15  ;;  %v2884_v15 = vld [vmem:[#allocation7 + $0xc0] ss:$8 sps:$4 sm:$0xff]  }
  0xd2   :  { %1447 = vmatprep.subr.bf16.mxu1 %v2760_v16  ;;  %v2889_v16 = vld [vmem:[#allocation7 + $0xd4] ss:$8 sps:$4 sm:$0xff]  }
  0xd3   :  { %1932 = vmatpush1.bf16.msra.mxu0 %v2851_v29  ;;  %v2824_v29 = vld [vmem:[#allocation5 + $0x508] ss:$16 sps:$4 sm:$0xff]  }
  0xd4   :  { %1933 = vmatprep.subr.bf16.mxu0 %v2856_v31  ;;  %v2827_v31 = vld [vmem:[#allocation5 + $0x528] ss:$16 sps:$4 sm:$0xff]  }
  0xd5   :  { %1448 = vmatpush1.bf16.msra.mxu1 %v2758_v17  ;;  %v2814_v17 = vld [vmem:[#allocation5 + $0x48c] ss:$16 sps:$4 sm:$0xff]  }
  0xd6   :  { %1449 = vmatprep.subr.bf16.mxu1 %v2763_v18  ;;  %v2812_v18 = vld [vmem:[#allocation5 + $0x488] ss:$16 sps:$4 sm:$0xff]  }
  0xd7   :  { %1934 = vmatpush1.bf16.msra.mxu0 %v2854_v33  ;;  %v2830_v33 = vld [vmem:[#allocation5 + $0x548] ss:$16 sps:$4 sm:$0xff]  }
  0xd8   :  { %1935 = vmatprep.subr.bf16.mxu0 %v2859_v36  ;;  %v2833_v36 = vld [vmem:[#allocation5 + $0x568] ss:$16 sps:$4 sm:$0xff]  }
  0xd9   :  { %1450 = vmatpush1.bf16.msra.mxu1 %v2761_v19  ;;  %v2817_v19 = vld [vmem:[#allocation5 + $0x4ac] ss:$16 sps:$4 sm:$0xff]  }
  0xda   :  { %1451 = vmatprep.subr.bf16.mxu1 %v2766_v20  ;;  %v2815_v20 = vld [vmem:[#allocation5 + $0x4a8] ss:$16 sps:$4 sm:$0xff]  }
  0xdb   :  { %1936 = vmatpush1.bf16.msra.mxu0 %v2857_v38  ;;  %v2836_v38 = vld [vmem:[#allocation5 + $0x588] ss:$16 sps:$4 sm:$0xff]  }
  0xdc   :  { %1937 = vmatprep.subr.bf16.mxu0 %v2862_v40  ;;  %v2839_v40 = vld [vmem:[#allocation5 + $0x5a8] ss:$16 sps:$4 sm:$0xff]  }
  0xdd   :  { %1452 = vmatpush1.bf16.msra.mxu1 %v2764_v21  ;;  %v2820_v21 = vld [vmem:[#allocation5 + $0x4cc] ss:$16 sps:$4 sm:$0xff]  }
  0xde   :  { %1453 = vmatprep.subr.bf16.mxu1 %v2769_v22  ;;  %v2892_v22 = vld [vmem:[#allocation7 + $0xe4] ss:$8 sps:$4 sm:$0xff]  }
  0xdf   :  { %1938 = vmatpush1.bf16.msra.mxu0 %v2860_v42  ;;  %v2842_v42 = vld [vmem:[#allocation5 + $0x5c8] ss:$16 sps:$4 sm:$0xff]  }
  0xe0   :  { %1939 = vmatprep.subr.bf16.mxu0 %v2865_v44  ;;  %v2845_v44 = vld [vmem:[#allocation5 + $0x5e8] ss:$16 sps:$4 sm:$0xff]  }
  0xe1   :  { %1454 = vmatpush1.bf16.msra.mxu1 %v2767_v23  ;;  %v2890_v23 = vld [vmem:[#allocation7 + $0xe0] ss:$8 sps:$4 sm:$0xff]  }
  0xe2   :  { %1455 = vmatprep.subr.bf16.mxu1 %v2772_v24  ;;  %v2818_v24 = vld [vmem:[#allocation5 + $0x4c8] ss:$16 sps:$4 sm:$0xff]  }
  0xe3   :  { %1940 = vmatpush1.bf16.msra.mxu0 %v2863_v46 }
  0xe4   :  { %1941 = vmatprep.subr.bf16.mxu0 %v2868_v48 }
  0xe5   :  { %1456 = vmatpush1.bf16.msra.mxu1 %v2770_v6  ;;  %v2823_v6 = vld [vmem:[#allocation5 + $0x4ec] ss:$16 sps:$4 sm:$0xff]  }
  0xe6   :  { %1457 = vmatprep.subr.bf16.mxu1 %v2775_v51  ;;  %v2895_v51 = vld [vmem:[#allocation7 + $0xf4] ss:$8 sps:$4 sm:$0xff]  }
  0xe7   :  { %1942 = vmatpush1.bf16.msra.mxu0 %v2866_v50 }
  0xe8   :  { %1943 = vmatprep.subr.bf16.mxu0 %v2871_v53  ;;  %v3217_v53 = vld [vmem:[%s3254_s2] sm:$0xf] }
  0xe9   :  { %1458 = vmatpush1.bf16.msra.mxu1 %v2773_v28  ;;  %v2898_v28 = vld [vmem:[#allocation7 + $0x104] ss:$8 sps:$4 sm:$0xff]  }
  0xea   :  { %1459 = vmatprep.subr.bf16.mxu1 %v2778_v30  ;;  %v2829_v30 = vld [vmem:[#allocation5 + $0x52c] ss:$16 sps:$4 sm:$0xff]  }
  0xeb   :  { %1944 = vmatpush1.bf16.msra.mxu0 %v2869_v55 }
  0xec   :  { %1945 = vmatprep.subr.bf16.mxu0 %v2874_v57 }
  0xed   :  { %1460 = vmatpush1.bf16.msra.mxu1 %v2776_v32  ;;  %v2832_v32 = vld [vmem:[#allocation5 + $0x54c] ss:$16 sps:$4 sm:$0xff]  }
  0xee   :  { %1461 = vmatprep.subr.bf16.mxu1 %v2781_v35  ;;  %v2835_v35 = vld [vmem:[#allocation5 + $0x56c] ss:$16 sps:$4 sm:$0xff]  }
  0xef   :  { %1946 = vmatpush1.bf16.msra.mxu0 %v2872_v59 }
  0xf0   :  { %1947 = vmatprep.subr.bf16.mxu0 %v2877_v61 }
  0xf1   :  { %1462 = vmatpush1.bf16.msra.mxu1 %v2779_v37  ;;  %v2838_v37 = vld [vmem:[#allocation5 + $0x58c] ss:$16 sps:$4 sm:$0xff]  }
  0xf2   :  { %1463 = vmatprep.subr.bf16.mxu1 %v2784_v39  ;;  %v2841_v39 = vld [vmem:[#allocation5 + $0x5ac] ss:$16 sps:$4 sm:$0xff]  }
  0xf3   :  { %1948 = vmatpush1.bf16.msra.mxu0 %v2875_v63 }
  0xf4   :  { %1949 = vmatprep.subr.bf16.mxu0 %v2880_v1 }
  0xf5   :  { %1464 = vmatpush1.bf16.msra.mxu1 %v2782_v41  ;;  %v2844_v41 = vld [vmem:[#allocation5 + $0x5cc] ss:$16 sps:$4 sm:$0xff]  }
  0xf6   :  { %1465 = vmatprep.subr.bf16.mxu1 %v2787_v43  ;;  %v2847_v43 = vld [vmem:[#allocation5 + $0x5ec] ss:$16 sps:$4 sm:$0xff]  }
  0xf7   :  { %1950 = vmatpush1.bf16.msra.mxu0 %v2878_v4 }
  0xf8   :  { %1951 = vmatprep.subr.bf16.mxu0 %v2883_v5  ;;  %v2901_v5 = vld [vmem:[#allocation7 + $0x114] ss:$8 sps:$4 sm:$0xff]  }
  0xf9   :  { %1466 = vmatpush1.bf16.msra.mxu1 %v2785_v45 }
  0xfa   :  { %1467 = vmatprep.subr.bf16.mxu1 %v2790_v47 }
  0xfb   :  { %1952 = vmatpush1.bf16.msra.mxu0 %v2881_v10  ;;  %v2946_v10 = vld [vmem:[#allocation8 + $0x48] sm:$0xff]  }
  0xfc   :  { %1953 = vmatprep.subr.bf16.mxu0 %v2886_v11  ;;  %v2899_v11 = vld [vmem:[#allocation7 + $0x110] ss:$8 sps:$4 sm:$0xff]  }
  0xfd   :  { %1468 = vmatpush1.bf16.msra.mxu1 %v2788_v49  ;;  %v278_v49 = vlaneseq }
  0xfe   :  { %1469 = vmatprep.subr.bf16.mxu1 %v2793_v52 }
  0xff   :  { %1954 = vmatpush1.bf16.msra.mxu0 %v2884_v15  ;;  %v3211_v50 = vshrl.u32 %v278_v49, 7  ;;  %v2948_v15 = vld [vmem:[#allocation8 + $0x50] sm:$0xff]  }
 0x100   :  { %1955 = vmatprep.subr.bf16.mxu0 %v2889_v16  ;;  %v2902_v16 = vld [vmem:[#allocation7 + $0x120] ss:$8 sps:$4 sm:$0xff]  }
 0x101   :  { %1470 = vmatpush1.bf16.msra.mxu1 %v2791_v54  ;;  %v280_v52 = vsub.s32 0, %v3211_v50  ;;  %v284_v54 = vsub.s32 1, %v3211_v50 }
 0x102   :  { %1471 = vmatprep.subr.bf16.mxu1 %v2796_v56 }
 0x103   :  { %v285_v55 = vrot.slane %v3217_v53, %v284_v54 }
 0x105   :  { %1472 = vmatpush1.bf16.msra.mxu1 %v2794_v58 }
 0x106   :  { %1473 = vmatprep.subr.bf16.mxu1 %v2799_v60 }
 0x109   :  { %1474 = vmatpush1.bf16.msra.mxu1 %v2797_v62 }
 0x10a   :  { %1484 = vmatprep.subr.bf16.mxu1 %v2802_v0 }
 0x10c   :  { %1476 = vmatmul.mubr.bf16.vlgmr.msra.gmra.mrb[4].mxu1 %v3189_v7  ;;  %v2809_v7 = vld [vmem:[#allocation5 + $0x468] ss:$16 sps:$4 sm:$0xff]  }
 0x10d   :  { %1485 = vmatpush1.bf16.msra.mxu1 %v2800_v2  ;;  %1516 = vmatprep.mubr.bf16.mxu1 %v3198_v34  ;;  %v2887_v34 = vld [vmem:[#allocation7 + $0xd0] ss:$8 sps:$4 sm:$0xff]  }
 0x10e   :  { %1486 = vmatprep.subr.bf16.mxu1 %v2805_v3  ;;  %1956 = vmatpush1.bf16.msra.mxu0 %v2887_v34  ;;  %v2896_v3 = vld [vmem:[#allocation7 + $0x100] ss:$8 sps:$4 sm:$0xff]   ;;  %v2950_v34 = vld [vmem:[#allocation8 + $0x58] sm:$0xff]  }
 0x10f   :  { %1957 = vmatprep.subr.bf16.mxu0 %v2892_v22  ;;  %v2908_v22 = vld [vmem:[#allocation7 + $0x140] ss:$8 sps:$4 sm:$0xff]  }
 0x111   :  { %1487 = vmatpush1.bf16.msra.mxu1 %v2803_v8  ;;  %v2944_v8 = vld [vmem:[#allocation8 + $0x40] sm:$0xff]  }
 0x112   :  { %1488 = vmatprep.subr.bf16.mxu1 %v2808_v9  ;;  %1958 = vmatpush1.bf16.msra.mxu0 %v2890_v23  ;;  %v2945_v9 = vld [vmem:[#allocation8] sm:$0xff]   ;;  %v2913_v23 = vld [vmem:[#allocation7 + $0x154] ss:$8 sps:$4 sm:$0xff]  }
 0x113   :  { %1959 = vmatprep.subr.bf16.mxu0 %v2895_v51  ;;  %v2911_v51 = vld [vmem:[#allocation7 + $0x150] ss:$8 sps:$4 sm:$0xff]  }
 0x115   :  { %1489 = vmatpush1.bf16.msra.mxu1 %v2806_v13  ;;  %v2904_v13 = vld [vmem:[#allocation7 + $0x124] ss:$8 sps:$4 sm:$0xff]  }
 0x116   :  { %1490 = vmatprep.subr.bf16.mxu1 %v2811_v14  ;;  %1960 = vmatpush1.bf16.msra.mxu0 %v2893_v25  ;;  %v2947_v14 = vld [vmem:[#allocation8 + $0x8] sm:$0xff]  }
 0x117   :  { %1970 = vmatprep.subr.bf16.mxu0 %v2898_v28  ;;  %v2916_v25 = vld [vmem:[#allocation7 + $0x164] ss:$8 sps:$4 sm:$0xff]   ;;  %v2919_v28 = vld [vmem:[#allocation7 + $0x174] ss:$8 sps:$4 sm:$0xff]  }
 0x119   :  { %1491 = vmatpush1.bf16.msra.mxu1 %v2809_v7  ;;  %v2907_v7 = vld [vmem:[#allocation7 + $0x134] ss:$8 sps:$4 sm:$0xff]  }
 0x11a   :  { %1492 = vmatprep.subr.bf16.mxu1 %v2814_v17  ;;  %v2949_v17 = vld [vmem:[#allocation8 + $0x10] sm:$0xff]  }
 0x11d   :  { %1493 = vmatpush1.bf16.msra.mxu1 %v2812_v18  ;;  %v2905_v18 = vld [vmem:[#allocation7 + $0x130] ss:$8 sps:$4 sm:$0xff]  }
 0x11e   :  { %1494 = vmatprep.subr.bf16.mxu1 %v2817_v19  ;;  %v2910_v19 = vld [vmem:[#allocation7 + $0x144] ss:$8 sps:$4 sm:$0xff]  }
 0x121   :  { %1495 = vmatpush1.bf16.msra.mxu1 %v2815_v20  ;;  %v2951_v20 = vld [vmem:[#allocation8 + $0x18] sm:$0xff]  }
 0x122   :  { %1496 = vmatprep.subr.bf16.mxu1 %v2820_v21  ;;  %v2952_v21 = vld [vmem:[#allocation8 + $0x60] sm:$0xff]  }
 0x125   :  { %1497 = vmatpush1.bf16.msra.mxu1 %v2818_v24  ;;  %v2953_v24 = vld [vmem:[#allocation8 + $0x20] sm:$0xff]  }
 0x126   :  { %1498 = vmatprep.subr.bf16.mxu1 %v2823_v6  ;;  %v2954_v6 = vld [vmem:[#allocation8 + $0x68] sm:$0xff]  }
 0x129   :  { %1499 = vmatpush1.bf16.msra.mxu1 %v2821_v26  ;;  %v2955_v26 = vld [vmem:[#allocation8 + $0x28] sm:$0xff]  }
 0x12a   :  { %1500 = vmatprep.subr.bf16.mxu1 %v2826_v27  ;;  %v2914_v27 = vld [vmem:[#allocation7 + $0x160] ss:$8 sps:$4 sm:$0xff]  }
 0x12d   :  { %1501 = vmatpush1.bf16.msra.mxu1 %v2824_v29  ;;  %v2917_v29 = vld [vmem:[#allocation7 + $0x170] ss:$8 sps:$4 sm:$0xff]  }
 0x12e   :  { %1502 = vmatprep.subr.bf16.mxu1 %v2829_v30  ;;  %v2922_v30 = vld [vmem:[#allocation7 + $0x184] ss:$8 sps:$4 sm:$0xff]  }
 0x131   :  { %1503 = vmatpush1.bf16.msra.mxu1 %v2827_v31  ;;  %v2920_v31 = vld [vmem:[#allocation7 + $0x180] ss:$8 sps:$4 sm:$0xff]  }
 0x132   :  { %1504 = vmatprep.subr.bf16.mxu1 %v2832_v32  ;;  %v2925_v32 = vld [vmem:[#allocation7 + $0x194] ss:$8 sps:$4 sm:$0xff]  }
 0x135   :  { %1505 = vmatpush1.bf16.msra.mxu1 %v2830_v33  ;;  %v2923_v33 = vld [vmem:[#allocation7 + $0x190] ss:$8 sps:$4 sm:$0xff]  }
 0x136   :  { %1506 = vmatprep.subr.bf16.mxu1 %v2835_v35  ;;  %v2928_v35 = vld [vmem:[#allocation7 + $0x1a4] ss:$8 sps:$4 sm:$0xff]  }
 0x139   :  { %1507 = vmatpush1.bf16.msra.mxu1 %v2833_v36  ;;  %v2926_v36 = vld [vmem:[#allocation7 + $0x1a0] ss:$8 sps:$4 sm:$0xff]  }
 0x13a   :  { %1508 = vmatprep.subr.bf16.mxu1 %v2838_v37  ;;  %v2931_v37 = vld [vmem:[#allocation7 + $0x1b4] ss:$8 sps:$4 sm:$0xff]  }
 0x13d   :  { %1509 = vmatpush1.bf16.msra.mxu1 %v2836_v38  ;;  %v2929_v38 = vld [vmem:[#allocation7 + $0x1b0] ss:$8 sps:$4 sm:$0xff]  }
 0x13e   :  { %1510 = vmatprep.subr.bf16.mxu1 %v2841_v39  ;;  %v2934_v39 = vld [vmem:[#allocation7 + $0x1c4] ss:$8 sps:$4 sm:$0xff]  }
 0x141   :  { %1511 = vmatpush1.bf16.msra.mxu1 %v2839_v40  ;;  %v2932_v40 = vld [vmem:[#allocation7 + $0x1c0] ss:$8 sps:$4 sm:$0xff]  }
 0x142   :  { %1512 = vmatprep.subr.bf16.mxu1 %v2844_v41  ;;  %v2937_v41 = vld [vmem:[#allocation7 + $0x1d4] ss:$8 sps:$4 sm:$0xff]  }
 0x145   :  { %1513 = vmatpush1.bf16.msra.mxu1 %v2842_v42  ;;  %v2935_v42 = vld [vmem:[#allocation7 + $0x1d0] ss:$8 sps:$4 sm:$0xff]  }
 0x146   :  { %1514 = vmatprep.subr.bf16.mxu1 %v2847_v43  ;;  %v2940_v43 = vld [vmem:[#allocation7 + $0x1e4] ss:$8 sps:$4 sm:$0xff]  }
 0x149   :  { %1515 = vmatpush1.bf16.msra.mxu1 %v2845_v44  ;;  %v2938_v44 = vld [vmem:[#allocation7 + $0x1e0] ss:$8 sps:$4 sm:$0xff]  }
 0x14a   :  { %2497 = vmatprep.subr.bf16.mxu1 %v2944_v8 }
 0x14c   :  { %1517 = vmatmul.mubr.bf16.vlgmr.msra.gmra.mrb[4].mxu1 %v3203_v12  ;;  %v281_v12 = vrot.slane %v3217_v53, %v280_v52 }
 0x14d   :  { %2498 = vmatpush3.bf16.msra.mxu1 %v2945_v9 }
 0x14e   :  { %2499 = vmatprep.subr.bf16.mxu1 %v2946_v10 }
 0x151   :  { %2500 = vmatpush3.bf16.msra.mxu1 %v2947_v14 }
 0x152   :  { %2501 = vmatprep.subr.bf16.mxu1 %v2948_v15 }
 0x155   :  { %2502 = vmatpush3.bf16.msra.mxu1 %v2949_v17 }
 0x156   :  { %2503 = vmatprep.subr.bf16.mxu1 %v2950_v34 }
 0x159   :  { %2504 = vmatpush3.bf16.msra.mxu1 %v2951_v20 }
 0x15a   :  { %2505 = vmatprep.subr.bf16.mxu1 %v2952_v21 }
 0x15d   :  { %2506 = vmatpush3.bf16.msra.mxu1 %v2953_v24 }
 0x15e   :  { %2507 = vmatprep.subr.bf16.mxu1 %v2954_v6 }
 0x15f   :  { %v1313_v45 = vpop.f32.mrb[0].mxu1 }
 0x160   :  { %v1315_v46 = vpop.f32.mrb[1].mxu1  ;;  %v1314_v56 = vadd.f32 %v1313_v45, %v281_v12  ;;  %v2943_v45 = vld [vmem:[#allocation7 + $0x1f4] ss:$8 sps:$4 sm:$0xff]  }
 0x161   :  { %v1317_v47 = vpop.f32.mrb[2].mxu1  ;;  %v1316_v57 = vadd.f32 %v1315_v46, %v285_v55  ;;  %2508 = vmatpush3.bf16.msra.mxu1 %v2955_v26  ;;  %v2941_v46 = vld [vmem:[#allocation7 + $0x1f0] ss:$8 sps:$4 sm:$0xff]  }
 0x162   :  { %v1318_v48 = vpop.f32.mrb[3].mxu1  ;;  %v288_v47 = vsub.s32 2, %v3211_v50 }
 0x163   :  { %v292_v48 = vsub.s32 3, %v3211_v50 }
 0x164   :  { %v289_v49 = vrot.slane %v3217_v53, %v288_v47 }
 0x165   :  { %v293_v12 = vrot.slane %v3217_v53, %v292_v48  ;;  %v1597_v53 = vld [vmem:[%s3256_s4] sm:$0x3] }
 0x166   :  { %v1606_v8 = vrot.slane %v1597_v53, %v284_v54 }
 0x1a0   :  { %v1395_v58 = vpop.f32.mrb[0].mxu0 }
 0x1a1   :  { %v2520_v59 = vadd.f32 %v1395_v58, %v1314_v56  ;;  %v1397_v60 = vpop.f32.mrb[1].mxu0 }
 0x1a2   :  { %v2522_v61 = vadd.f32 %v1397_v60, %v1316_v57  ;;  %v1399_v62 = vpop.f32.mrb[2].mxu0 }
 0x1a3   :  { %v1525_v63 = vmax.f32 %v2520_v59, 0.0  ;;  %v1400_v0 = vpop.f32.mrb[3].mxu0 }
 0x1a4   :  { %v1526_v1 = vmax.f32 %v2522_v61, 0.0 }
 0x1a5   :  { %v1529_v4 = vpack.c.bf16 %v1525_v63, %v1525_v63 }
 0x1a6   :  { %v1530_v2 = vpack.c.bf16 %v1526_v1, %v1526_v1  ;;  %v2956_v1 = vld [vmem:[#allocation8 + $0x70] sm:$0xff]  }
 0x1a7   :  { %2509 = vmatprep.subr.bf16.mxu1 %v2956_v1 }
 0x1a8   :  { %1961 = vmatprep.mubr.bf16.mxu0 %v1530_v2  ;;  %v2957_v2 = vld [vmem:[#allocation8 + $0x30] sm:$0xff]  }
 0x1a9   :  { %1962 = vmatmul.mubr.bf16.vlgmr.msra.gmra.mrb[4].mxu0 %v1529_v4  ;;  %2510 = vmatpush3.bf16.msra.mxu1 %v2957_v2  ;;  %v2959_v4 = vld [vmem:[#allocation8 + $0x38] sm:$0xff]  }
 0x1aa   :  { %1971 = vmatpush1.bf16.msra.mxu0 %v2896_v3  ;;  %v2958_v3 = vld [vmem:[#allocation8 + $0x78] sm:$0xff]  }
 0x1ab   :  { %1972 = vmatprep.subr.bf16.mxu0 %v2901_v5  ;;  %2511 = vmatprep.subr.bf16.mxu1 %v2958_v3  ;;  %v1602_v5 = vrot.slane %v1597_v53, %v280_v52  ;;  %v2480_v52 = vld [vmem:[%s3258_s6] ss:$0 sm:$0xff]  ;;  %s3052_s6 = scalar_lea.vmem %s2208_s9, 128 }
 0x1ac   :  { %p3053_p4 = scmp.ne.s32.totalorder %s2208_s9, %s3052_s6  ;;  %p3058_p6 = scmp.lt.s32.totalorder %s3052_s6, %s3052_s6 }
 0x1ad   :  { %2512 = vmatpush3.bf16.msra.mxu1 %v2959_v4 }
 0x1ae   :  { %1973 = vmatpush1.bf16.msra.mxu0 %v2899_v11  ;;  %p3059_p7 = por %p3058_p6, %p3057_p5 }
 0x1af   :  { %1974 = vmatprep.subr.bf16.mxu0 %v2904_v13 }
 0x1b0   :  { %p3060_p8 = pnand %p3059_p7, %p3053_p4 }
 0x1b2   :  { %1975 = vmatpush1.bf16.msra.mxu0 %v2902_v16 }
 0x1b3   :  { %1976 = vmatprep.subr.bf16.mxu0 %v2907_v7 }
 0x1b6   :  { %1977 = vmatpush1.bf16.msra.mxu0 %v2905_v18 }
 0x1b7   :  { %1978 = vmatprep.subr.bf16.mxu0 %v2910_v19 }
 0x1ba   :  { %1979 = vmatpush1.bf16.msra.mxu0 %v2908_v22 }
 0x1bb   :  { %1980 = vmatprep.subr.bf16.mxu0 %v2913_v23 }
 0x1be   :  { %1981 = vmatpush1.bf16.msra.mxu0 %v2911_v51 }
 0x1bf   :  { %1982 = vmatprep.subr.bf16.mxu0 %v2916_v25 }
 0x1c2   :  { %1983 = vmatpush1.bf16.msra.mxu0 %v2914_v27 }
 0x1c3   :  { %1984 = vmatprep.subr.bf16.mxu0 %v2919_v28 }
 0x1c6   :  { %1985 = vmatpush1.bf16.msra.mxu0 %v2917_v29 }
 0x1c7   :  { %1986 = vmatprep.subr.bf16.mxu0 %v2922_v30 }
 0x1ca   :  { %1987 = vmatpush1.bf16.msra.mxu0 %v2920_v31 }
 0x1cb   :  { %1988 = vmatprep.subr.bf16.mxu0 %v2925_v32 }
 0x1ce   :  { %1989 = vmatpush1.bf16.msra.mxu0 %v2923_v33 }
 0x1cf   :  { %1990 = vmatprep.subr.bf16.mxu0 %v2928_v35 }
 0x1d2   :  { %1991 = vmatpush1.bf16.msra.mxu0 %v2926_v36 }
 0x1d3   :  { %1992 = vmatprep.subr.bf16.mxu0 %v2931_v37 }
 0x1d6   :  { %1993 = vmatpush1.bf16.msra.mxu0 %v2929_v38 }
 0x1d7   :  { %1994 = vmatprep.subr.bf16.mxu0 %v2934_v39 }
 0x1da   :  { %1995 = vmatpush1.bf16.msra.mxu0 %v2932_v40 }
 0x1db   :  { %1996 = vmatprep.subr.bf16.mxu0 %v2937_v41 }
 0x1de   :  { %1997 = vmatpush1.bf16.msra.mxu0 %v2935_v42 }
 0x1df   :  { %1998 = vmatprep.subr.bf16.mxu0 %v2940_v43 }
 0x1e2   :  { %1999 = vmatpush1.bf16.msra.mxu0 %v2938_v44 }
 0x1e3   :  { %2000 = vmatprep.subr.bf16.mxu0 %v2943_v45 }
 0x1e6   :  { %2001 = vmatpush1.bf16.msra.mxu0 %v2941_v46 }
 0x21f   :  { %v1518_v55 = vpop.f32.mrb[4].mxu1 }
 0x220   :  { %v2523_v56 = vadd.f32 %v1518_v55, %v289_v49  ;;  %v1520_v57 = vpop.f32.mrb[5].mxu1 }
 0x221   :  { %v2524_v58 = vadd.f32 %v1520_v57, %v293_v12  ;;  %v1522_v59 = vpop.f32.mrb[6].mxu1 }
 0x222   :  { %v1527_v60 = vmax.f32 %v2523_v56, 0.0  ;;  %v1523_v61 = vpop.f32.mrb[7].mxu1 }
 0x223   :  { %v1528_v62 = vmax.f32 %v2524_v58, 0.0 }
 0x224   :  { %v1531_v0 = vpack.c.bf16 %v1527_v60, %v1527_v60 }
 0x225   :  { %v1532_v63 = vpack.c.bf16 %v1528_v62, %v1528_v62 }
 0x227   :  { %2002 = vmatprep.mubr.bf16.mxu0 %v1532_v63 }
 0x228   :  { %2003 = vmatmul.mubr.bf16.vlgmr.msra.gmra.mrb[4].mxu0 %v1531_v0 }
 0x2fb   :  { %v2004_v9 = vpop.f32.mrb[4].mxu0 }
 0x2fc   :  { %v2525_v10 = vadd.f32 %v2004_v9, %v1602_v5  ;;  %v2006_v11 = vpop.f32.mrb[5].mxu0 }
 0x2fd   :  { %v2526_v13 = vadd.f32 %v2006_v11, %v1606_v8  ;;  %v2008_v14 = vpop.f32.mrb[6].mxu0 }
 0x2fe   :  { %v2011_v15 = vmax.f32 %v2525_v10, 0.0  ;;  %v2009_v16 = vpop.f32.mrb[7].mxu0 }
 0x2ff   :  { %v2012_v7 = vmax.f32 %v2526_v13, 0.0 }
 0x300   :  { %v2013_v34 = vpack.c.bf16 %v2011_v15, %v2011_v15 }
 0x301   :  { %v2014_v17 = vpack.c.bf16 %v2012_v7, %v2012_v7 }
 0x303   :  { %2182 = vmatprep.mubr.bf16.mxu1 %v2014_v17 }
 0x304   :  { %2183 = vmatmul.mubr.bf16.vlgmr.msra.gmra.mrb[8].mxu1 %v2013_v34 }
 0x3d7   :  { %v2513_v18 = vpop.f32.mrb[8].mxu1 }
 0x3d8   :  { %v2514_v19 = vpop.f32.mrb[9].mxu1 }
 0x3d9   :  { %v2515_v50 = vadd.f32 %v2514_v19, %v2513_v18  ;;  %v2516_v54 = vpop.f32.mrb[10].mxu1 }
 0x3da   :  { %v2517_v20 = vpop.f32.mrb[11].mxu1 }
 0x3db   :  { %v2185_v21 = vadd.f32 %v2515_v50, %v2480_v52 }
 0x3dd   :  { %2190 = vmax.xlane.f32.xlu0 %v2185_v21 }
 0x46a   :  { %v2191_v22 = vpop.xlane.xlu0 %2190 }
 0x46b   :  { %v2192_v23 = vsub.f32 %v2185_v21, %v2191_v22 }
 0x46d   :  { %v2193_v24 = vmul.f32 1.442695, %v2192_v23 }
 0x46f   :  { %2960 = vpow2.f32 %v2193_v24 }
 0x479   :  { %v2961_v6 = vpop.eup %2960 }
 0x47a   :  { %2195 = vadd.xlane.f32.xlu0 %v2961_v6 }
 0x507   :  { %v2196_v51 = vpop.xlane.xlu0 %2195 }
 0x508   :  { %2962 = vlog2.f32 %v2196_v51 }
 0x512   :  { %v2963_v25 = vpop.eup %2962 }
 0x513   :  { %v2198_v26 = vmul.f32 0.6931472, %v2963_v25 }
 0x515   :  { %v2199_v27 = vsub.f32 %v2192_v23, %v2198_v26 }
 0x517   :  { %2200 = vst [vmem:[#allocation10] sm:$0xff] %v2199_v27 }
 0x518   :  { %3063 = shalt.err (!%p3060_p8)
}
 0x519   :  { %s3064_s12 = scalar_lea.hbm %s3259_s7, 128 }
 0x51a   :  { %p3065_p9 = scmp.ne.s32.totalorder %s3259_s7, %s3064_s12  ;;  %p3068_p10 = scmp.lt.u32.totalorder %s3064_s12, %s3259_s7 }
 0x51c   :  { %p3070_p11 = pnand %p3068_p10, %p3065_p9 }
 0x51e   :  { %3073 = shalt.err (!%p3070_p11)
}
 0x51f   :  { %2210 = dma.vmem_to_hbm [thread:$0]  %s2208_s9, 128, %s3259_s7, [#allocation4]  }
 0x520   :  { %3080 = dma.done.wait [#allocation4], 128  }
 0x521   :  { %3081 = vsyncadd [#allocation4], 4294967168 }
 0x522   :  { %2214 = vsyncpa [#allocation3], 1 }
 0x523   :  { %2215 = vsyncpa [#allocation6], 1 }
 0x524   :  { %2216 = vsyncpa [#allocation9], 1 }
 0x525   :  { %2217 = vsyncpa [#allocation4], 1 }

</bundles_post_ra>
